<compile_context>
chip_gen: v5e
topology: v5e:2x2
jax: 0.10.0
libtpu: 0.0.40
codegen_flags: <defaults>
</compile_context>

<pallas_src>
import numpy as np
import jax
import jax.numpy as jnp
from jax import lax
from jax.experimental import pallas as pl
from jax.experimental.pallas import tpu as pltpu

DEGREE = 3
NUM_SPLINES = 10
NUM_POINTS = 100
TBL_PAD = 128        # spline table padded to one full vreg lane row
LANE_W = 512         # lane-dense slab width (multiple of 128)
STRIP_M = 8          # rows per register-resident strip (one f32 sublane tile)
MAX_TILE_M = 512     # max rows per grid step (multiple of STRIP_M)

# Tri-state cache: None = not probed yet, True/False = lane-gather path usable.
_GATHER_OK = [None]


def _round_up(a, b):
    return -(-a // b) * b


def precompute_bspline_basis(num_splines, degree, num_points=100):
    knots = np.linspace(0, 1, num_splines + degree + 1)
    x = np.linspace(0, 1, num_points)
    basis = np.zeros((num_points, num_splines), dtype=np.float64)

    def cox_de_boor(x, k, d, knots):
        if d == 0:
            return np.where((knots[k] <= x) & (x < knots[k + 1]), 1.0, 0.0)
        a = (x - knots[k]) / (knots[k + d] - knots[k] + 1e-08)
        b = (knots[k + d + 1] - x) / (knots[k + d + 1] - knots[k + 1] + 1e-08)
        return a * cox_de_boor(x, k, d - 1, knots) + b * cox_de_boor(x, k + 1, d - 1, knots)

    for i in range(num_splines):
        basis[:, i] = cox_de_boor(x, i, degree, knots)
    return basis.astype(np.float32)


def _make_kernel(use_gather, num_points):
    """Kernel body factory.

    use_gather=True : tbl_ref is an (STRIP_M, 128) f32 VMEM block; the lookup is
                      a per-128-lane-chunk XLU dynamic gather.
    use_gather=False: tbl_ref is a (num_points,) f32 SMEM vector; the lookup is a
                      fully unrolled compare/select chain (always lowers).
    Both variants register-block the work into 8-row strips so x / idx / spline
    stay resident in vregs for the whole lookup (no VMEM spill traffic).
    """

    def kernel(x_ref, tbl_ref, w_ref, o_ref):
        w = w_ref[0]
        n_strips = x_ref.shape[0] // STRIP_M
        if use_gather:
            tbl2d = tbl_ref[...]          # (8, 128) f32 — one vreg, loop-invariant

        def strip_body(s, carry):
            r0 = pl.multiple_of(s * STRIP_M, STRIP_M)
            x = x_ref[pl.ds(r0, STRIP_M), :].astype(jnp.float32)

            # idx = clamp(trunc(x * (P-1)), 0, P-1)   (matches torch .long()+clamp)
            idx = jnp.clip((x * (num_points - 1)).astype(jnp.int32),
                           0, num_points - 1)

            if use_gather:
                # XLU lane gather per 128-lane chunk; indices already in-bounds.
                parts = [
                    jnp.take_along_axis(
                        tbl2d, idx[:, c * 128:(c + 1) * 128], axis=1,
                        mode="promise_in_bounds")
                    for c in range(x.shape[1] // 128)
                ]
                spline = jnp.concatenate(parts, axis=1)
            else:
                # Fully unrolled select chain: seed carry with tbl[0] (clamp
                # guarantees idx==0 elements are covered) then 99 static selects
                # with immediate p and static SMEM offsets.
                spline = jnp.broadcast_to(tbl_ref[0], x.shape)
                for p in range(1, num_points):
                    spline = jnp.where(idx == p, tbl_ref[p], spline)

            # SiLU: x * sigmoid(x).  exp + approx reciprocal run on the EUP slot;
            # one Newton step keeps ~1e-7 relative error (well inside 1e-5).
            d = 1.0 + jnp.exp(-x)
            r = pl.reciprocal(d, approx=True)
            r = r * (2.0 - d * r)

            o_ref[pl.ds(r0, STRIP_M), :] = (w * (x * r + spline)).astype(o_ref.dtype)
            return carry

        lax.fori_loop(0, n_strips, strip_body, 0, unroll=False)

    return kernel


def _pallas_forward(x2d, tbl_smem, tbl_vmem, w1, tile_m, num_blocks, use_gather):
    if use_gather:
        tbl_arg = tbl_vmem
        tbl_spec = pl.BlockSpec((STRIP_M, TBL_PAD), lambda i: (0, 0))
    else:
        tbl_arg = tbl_smem
        tbl_spec = pl.BlockSpec(memory_space=pltpu.MemorySpace.SMEM)

    return pl.pallas_call(
        _make_kernel(use_gather, NUM_POINTS),
        out_shape=jax.ShapeDtypeStruct(x2d.shape, x2d.dtype),
        grid=(num_blocks,),
        in_specs=[
            pl.BlockSpec((tile_m, LANE_W), lambda i: (i, 0)),
            tbl_spec,
            pl.BlockSpec(memory_space=pltpu.MemorySpace.SMEM),
        ],
        out_specs=pl.BlockSpec((tile_m, LANE_W), lambda i: (i, 0)),
        compiler_params=pltpu.CompilerParams(
            dimension_semantics=("parallel",)),
    )(x2d, tbl_arg, w1)


def precomputed_bspline_forward(x, basis, coefficients, w):
    orig_shape = x.shape
    orig_dtype = x.dtype

    # Hoisted contraction: spline table = basis @ coefficients, once per call.
    spline_tbl = jnp.dot(basis.astype(jnp.float32),
                         coefficients.astype(jnp.float32))            # (P,) f32
    # Lane-gather form: pad to 128 lanes, replicate over the strip's 8 sublanes.
    tbl_vmem = jnp.tile(
        jnp.pad(spline_tbl, (0, TBL_PAD - NUM_POINTS))[None, :], (STRIP_M, 1))
    w1 = jnp.asarray(w, jnp.float32).reshape(1)

    # Flatten to a lane-dense (rows, LANE_W) slab in the INPUT dtype (bf16
    # activations stay bf16 in HBM/VMEM; the f32 upcast happens in-kernel).
    flat = x.reshape(-1)
    n = flat.shape[0]
    rows = max(1, -(-n // LANE_W))
    rows8 = _round_up(rows, STRIP_M)

    num_blocks = max(1, -(-rows8 // MAX_TILE_M))
    # v7x megacore: give the "parallel" axis >= 2 (even) grid steps whenever there
    # is enough work to split across the two TensorCores.  Harmless on v5e/v6e.
    if rows8 >= 2 * STRIP_M:
        num_blocks = max(num_blocks, 2)
        if num_blocks % 2:
            num_blocks += 1
    tile_m = _round_up(-(-rows8 // num_blocks), STRIP_M)
    rows_pad = tile_m * num_blocks
    n_pad = rows_pad * LANE_W

    if n_pad != n:
        # TODO(synk): mask the ragged tail in-kernel instead of padding, to drop
        # the extra HBM read/write pair for non-slab-aligned inputs.
        flat = jnp.pad(flat, (0, n_pad - n))
    x2d = flat.reshape(rows_pad, LANE_W)

    # Prefer the XLU lane-gather kernel; fall back to the unrolled select chain
    # if this jax/Mosaic build cannot lower the in-kernel gather.
    if _GATHER_OK[0] is None:
        try:
            out2d = jax.block_until_ready(
                _pallas_forward(x2d, spline_tbl, tbl_vmem, w1,
                                tile_m, num_blocks, use_gather=True))
            _GATHER_OK[0] = True
        except Exception:
            _GATHER_OK[0] = False
    elif _GATHER_OK[0]:
        out2d = _pallas_forward(x2d, spline_tbl, tbl_vmem, w1,
                                tile_m, num_blocks, use_gather=True)
    if not _GATHER_OK[0]:
        out2d = _pallas_forward(x2d, spline_tbl, tbl_vmem, w1,
                                tile_m, num_blocks, use_gather=False)

    out_flat = out2d.reshape(-1)
    if n_pad != n:
        out_flat = out_flat[:n]
    return out_flat.reshape(orig_shape).astype(orig_dtype)


def reference_forward(x, basis, coefficients, w):
    # Pure-numpy reference mirroring the PyTorch forward.
    P = basis.shape[0]
    idx = np.clip((x * (P - 1)).astype(np.int64), 0, P - 1)
    b = basis[idx]                       # x.shape + (S,)
    spline = b @ coefficients            # x.shape
    silu = x / (1.0 + np.exp(-x))
    return w[0] * (silu + spline)


if __name__ == "__main__":
    key = jax.random.PRNGKey(0)
    k_x, k_c = jax.random.split(key)

    # Small NCHW input in [0, 1] (the spline's natural domain).
    x = jax.random.uniform(k_x, (2, 4, 16, 16), dtype=jnp.float32)

    basis_np = precompute_bspline_basis(NUM_SPLINES, DEGREE, NUM_POINTS)
    basis = jnp.asarray(basis_np)

    # Deterministic parameter init (matches shapes of the nn.Parameters).
    coefficients = jax.random.normal(k_c, (NUM_SPLINES,), dtype=jnp.float32) * 0.1
    w = jnp.ones((1,), dtype=jnp.float32)

    out = precomputed_bspline_forward(x, basis, coefficients, w)
    out = jax.block_until_ready(out)

    ref = reference_forward(
        np.asarray(x), basis_np, np.asarray(coefficients), np.asarray(w))
    np.testing.assert_allclose(np.asarray(out), ref, rtol=1e-5, atol=1e-5)

    print("KERNEL_OK")
</pallas_src>

<mosaic_0001>
module attributes {stable_mosaic.version = 11 : i64} {
  func.func @kernel(%arg0: i32, %arg1: memref<8x512xf32, #tpu.memory_space<vmem>>, %arg2: memref<8x128xf32, #tpu.memory_space<vmem>>, %arg3: memref<1xf32, #tpu.memory_space<smem>>, %arg4: memref<8x512xf32, #tpu.memory_space<vmem>>) attributes {dimension_semantics = [#tpu.dimension_semantics<parallel>], iteration_bounds = array<i64: 1>, scalar_prefetch = 0 : i64, scratch_operands = 0 : i64, tpu.core_type = #tpu.core_type<tc>, window_params = [{transform_indices = @transform_0, window_bounds = array<i64: 8, 512>}, {pipeline_mode = #tpu.pipeline_mode<synchronous>, transform_indices = @transform_1, window_bounds = array<i64: 8, 128>}, {transform_indices = @transform_2, window_bounds = array<i64: 1>}, {transform_indices = @transform_3, window_bounds = array<i64: 8, 512>}]} {
    %c0 = arith.constant 0 : index
    %0 = memref.load %arg3[%c0] : memref<1xf32, #tpu.memory_space<smem>>
    %c0_0 = arith.constant 0 : index
    %c0_1 = arith.constant 0 : index
    %1 = vector.load %arg2[%c0_0, %c0_1] : memref<8x128xf32, #tpu.memory_space<vmem>>, vector<8x128xf32>
    %c0_i32 = arith.constant 0 : i32
    %c8_i32 = arith.constant 8 : i32
    %2 = arith.muli %c0_i32, %c8_i32 : i32
    %3 = tpu.assume_multiple %2, 8 : i32
    %4 = arith.index_cast %3 : i32 to index
    %c0_2 = arith.constant 0 : index
    %5 = vector.load %arg1[%4, %c0_2] : memref<8x512xf32, #tpu.memory_space<vmem>>, vector<8x512xf32>
    %cst = arith.constant 9.900000e+01 : f32
    %6 = vector.broadcast %cst : f32 to vector<8x512xf32>
    %7 = arith.mulf %5, %6 : vector<8x512xf32>
    %8 = arith.fptosi %7 : vector<8x512xf32> to vector<8x512xi32>
    %c0_i32_3 = arith.constant 0 : i32
    %c99_i32 = arith.constant 99 : i32
    %9 = vector.broadcast %c0_i32_3 : i32 to vector<8x512xi32>
    %10 = arith.maxsi %9, %8 : vector<8x512xi32>
    %11 = vector.broadcast %c99_i32 : i32 to vector<8x512xi32>
    %12 = arith.minsi %11, %10 : vector<8x512xi32>
    %13 = vector.extract_strided_slice %12 {offsets = [0, 0], sizes = [8, 128], strides = [1, 1]} : vector<8x512xi32> to vector<8x128xi32>
    %14 = vector.shape_cast %13 : vector<8x128xi32> to vector<8x128x1xi32>
    %15 = vector.shape_cast %14 : vector<8x128x1xi32> to vector<8x128xi32>
    %16 = tpu.dynamic_gather %1[%15] in [1] : vector<8x128xf32>, vector<8x128xi32> -> vector<8x128xf32>
    %17 = vector.extract_strided_slice %12 {offsets = [0, 128], sizes = [8, 128], strides = [1, 1]} : vector<8x512xi32> to vector<8x128xi32>
    %18 = vector.shape_cast %17 : vector<8x128xi32> to vector<8x128x1xi32>
    %19 = vector.shape_cast %18 : vector<8x128x1xi32> to vector<8x128xi32>
    %20 = tpu.dynamic_gather %1[%19] in [1] : vector<8x128xf32>, vector<8x128xi32> -> vector<8x128xf32>
    %21 = vector.extract_strided_slice %12 {offsets = [0, 256], sizes = [8, 128], strides = [1, 1]} : vector<8x512xi32> to vector<8x128xi32>
    %22 = vector.shape_cast %21 : vector<8x128xi32> to vector<8x128x1xi32>
    %23 = vector.shape_cast %22 : vector<8x128x1xi32> to vector<8x128xi32>
    %24 = tpu.dynamic_gather %1[%23] in [1] : vector<8x128xf32>, vector<8x128xi32> -> vector<8x128xf32>
    %25 = vector.extract_strided_slice %12 {offsets = [0, 384], sizes = [8, 128], strides = [1, 1]} : vector<8x512xi32> to vector<8x128xi32>
    %26 = vector.shape_cast %25 : vector<8x128xi32> to vector<8x128x1xi32>
    %27 = vector.shape_cast %26 : vector<8x128x1xi32> to vector<8x128xi32>
    %28 = tpu.dynamic_gather %1[%27] in [1] : vector<8x128xf32>, vector<8x128xi32> -> vector<8x128xf32>
    %29 = tpu.concatenate %16, %20, %24, %28 in 1 : vector<8x128xf32>, vector<8x128xf32>, vector<8x128xf32>, vector<8x128xf32> -> vector<8x512xf32>
    %cst_4 = arith.constant 0.000000e+00 : f32
    %30 = vector.broadcast %cst_4 : f32 to vector<8x512xf32>
    %31 = arith.subf %30, %5 : vector<8x512xf32>
    %32 = math.exp %31 : vector<8x512xf32>
    %cst_5 = arith.constant 1.000000e+00 : f32
    %33 = vector.broadcast %cst_5 : f32 to vector<8x512xf32>
    %34 = arith.addf %33, %32 : vector<8x512xf32>
    %35 = tpu.reciprocal %34 {approx = true} : vector<8x512xf32> -> vector<8x512xf32>
    %36 = arith.mulf %34, %35 : vector<8x512xf32>
    %cst_6 = arith.constant 2.000000e+00 : f32
    %37 = vector.broadcast %cst_6 : f32 to vector<8x512xf32>
    %38 = arith.subf %37, %36 : vector<8x512xf32>
    %39 = arith.mulf %35, %38 : vector<8x512xf32>
    %40 = arith.mulf %5, %39 : vector<8x512xf32>
    %41 = arith.addf %40, %29 : vector<8x512xf32>
    %42 = vector.broadcast %0 : f32 to vector<8x512xf32>
    %43 = arith.mulf %42, %41 : vector<8x512xf32>
    %44 = arith.index_cast %3 : i32 to index
    %c0_7 = arith.constant 0 : index
    %45 = vector.load %arg4[%44, %c0_7] : memref<8x512xf32, #tpu.memory_space<vmem>>, vector<8x512xf32>
    tpu.vector_store %arg4[%44, %c0_7], %43 {strides = array<i32>} : memref<8x512xf32, #tpu.memory_space<vmem>>, vector<8x512xf32>,
    %c1_i32 = arith.constant 1 : i32
    return
  }
  func.func @transform_0(%arg0: i32) -> (i32, i32) {
    %c0_i32 = arith.constant 0 : i32
    %c0_i32_0 = arith.constant 0 : i32
    return %arg0, %c0_i32 : i32, i32
  }
  func.func @transform_1(%arg0: i32) -> (i32, i32) {
    %c0_i32 = arith.constant 0 : i32
    %c0_i32_0 = arith.constant 0 : i32
    %c0_i32_1 = arith.constant 0 : i32
    return %c0_i32, %c0_i32_0 : i32, i32
  }
  func.func @transform_2(%arg0: i32) -> i32 {
    %c0_i32 = arith.constant 0 : i32
    %c0_i32_0 = arith.constant 0 : i32
    return %c0_i32 : i32
  }
  func.func @transform_3(%arg0: i32) -> (i32, i32) {
    %c0_i32 = arith.constant 0 : i32
    %c0_i32_0 = arith.constant 0 : i32
    return %arg0, %c0_i32 : i32, i32
  }
}

module attributes {stable_mosaic.version = 11 : i64} {
  func.func @kernel(%arg0: i32, %arg1: memref<8x512xf32, #tpu.memory_space<vmem>>, %arg2: memref<100xf32, #tpu.memory_space<smem>>, %arg3: memref<1xf32, #tpu.memory_space<smem>>, %arg4: memref<8x512xf32, #tpu.memory_space<vmem>>) attributes {dimension_semantics = [#tpu.dimension_semantics<parallel>], iteration_bounds = array<i64: 1>, scalar_prefetch = 0 : i64, scratch_operands = 0 : i64, tpu.core_type = #tpu.core_type<tc>, window_params = [{transform_indices = @transform_0, window_bounds = array<i64: 8, 512>}, {transform_indices = @transform_1, window_bounds = array<i64: 100>}, {transform_indices = @transform_2, window_bounds = array<i64: 1>}, {transform_indices = @transform_3, window_bounds = array<i64: 8, 512>}]} {
    %c0 = arith.constant 0 : index
    %0 = memref.load %arg3[%c0] : memref<1xf32, #tpu.memory_space<smem>>
    %c0_i32 = arith.constant 0 : i32
    %c8_i32 = arith.constant 8 : i32
    %1 = arith.muli %c0_i32, %c8_i32 : i32
    %2 = tpu.assume_multiple %1, 8 : i32
    %3 = arith.index_cast %2 : i32 to index
    %c0_0 = arith.constant 0 : index
    %4 = vector.load %arg1[%3, %c0_0] : memref<8x512xf32, #tpu.memory_space<vmem>>, vector<8x512xf32>
    %cst = arith.constant 9.900000e+01 : f32
    %5 = vector.broadcast %cst : f32 to vector<8x512xf32>
    %6 = arith.mulf %4, %5 : vector<8x512xf32>
    %7 = arith.fptosi %6 : vector<8x512xf32> to vector<8x512xi32>
    %c0_i32_1 = arith.constant 0 : i32
    %c99_i32 = arith.constant 99 : i32
    %8 = vector.broadcast %c0_i32_1 : i32 to vector<8x512xi32>
    %9 = arith.maxsi %8, %7 : vector<8x512xi32>
    %10 = vector.broadcast %c99_i32 : i32 to vector<8x512xi32>
    %11 = arith.minsi %10, %9 : vector<8x512xi32>
    %c0_2 = arith.constant 0 : index
    %12 = memref.load %arg2[%c0_2] : memref<100xf32, #tpu.memory_space<smem>>
    %13 = vector.broadcast %12 : f32 to vector<8x512xf32>
    %c1_i32 = arith.constant 1 : i32
    %14 = vector.broadcast %c1_i32 : i32 to vector<8x512xi32>
    %15 = arith.cmpi eq, %11, %14 : vector<8x512xi32>
    %c1 = arith.constant 1 : index
    %16 = memref.load %arg2[%c1] : memref<100xf32, #tpu.memory_space<smem>>
    %17 = vector.broadcast %16 : f32 to vector<8x512xf32>
    %18 = arith.select %15, %17, %13 : vector<8x512xi1>, vector<8x512xf32>
    %c2_i32 = arith.constant 2 : i32
    %19 = vector.broadcast %c2_i32 : i32 to vector<8x512xi32>
    %20 = arith.cmpi eq, %11, %19 : vector<8x512xi32>
    %c2 = arith.constant 2 : index
    %21 = memref.load %arg2[%c2] : memref<100xf32, #tpu.memory_space<smem>>
    %22 = vector.broadcast %21 : f32 to vector<8x512xf32>
    %23 = arith.select %20, %22, %18 : vector<8x512xi1>, vector<8x512xf32>
    %c3_i32 = arith.constant 3 : i32
    %24 = vector.broadcast %c3_i32 : i32 to vector<8x512xi32>
    %25 = arith.cmpi eq, %11, %24 : vector<8x512xi32>
    %c3 = arith.constant 3 : index
    %26 = memref.load %arg2[%c3] : memref<100xf32, #tpu.memory_space<smem>>
    %27 = vector.broadcast %26 : f32 to vector<8x512xf32>
    %28 = arith.select %25, %27, %23 : vector<8x512xi1>, vector<8x512xf32>
    %c4_i32 = arith.constant 4 : i32
    %29 = vector.broadcast %c4_i32 : i32 to vector<8x512xi32>
    %30 = arith.cmpi eq, %11, %29 : vector<8x512xi32>
    %c4 = arith.constant 4 : index
    %31 = memref.load %arg2[%c4] : memref<100xf32, #tpu.memory_space<smem>>
    %32 = vector.broadcast %31 : f32 to vector<8x512xf32>
    %33 = arith.select %30, %32, %28 : vector<8x512xi1>, vector<8x512xf32>
    %c5_i32 = arith.constant 5 : i32
    %34 = vector.broadcast %c5_i32 : i32 to vector<8x512xi32>
    %35 = arith.cmpi eq, %11, %34 : vector<8x512xi32>
    %c5 = arith.constant 5 : index
    %36 = memref.load %arg2[%c5] : memref<100xf32, #tpu.memory_space<smem>>
    %37 = vector.broadcast %36 : f32 to vector<8x512xf32>
    %38 = arith.select %35, %37, %33 : vector<8x512xi1>, vector<8x512xf32>
    %c6_i32 = arith.constant 6 : i32
    %39 = vector.broadcast %c6_i32 : i32 to vector<8x512xi32>
    %40 = arith.cmpi eq, %11, %39 : vector<8x512xi32>
    %c6 = arith.constant 6 : index
    %41 = memref.load %arg2[%c6] : memref<100xf32, #tpu.memory_space<smem>>
    %42 = vector.broadcast %41 : f32 to vector<8x512xf32>
    %43 = arith.select %40, %42, %38 : vector<8x512xi1>, vector<8x512xf32>
    %c7_i32 = arith.constant 7 : i32
    %44 = vector.broadcast %c7_i32 : i32 to vector<8x512xi32>
    %45 = arith.cmpi eq, %11, %44 : vector<8x512xi32>
    %c7 = arith.constant 7 : index
    %46 = memref.load %arg2[%c7] : memref<100xf32, #tpu.memory_space<smem>>
    %47 = vector.broadcast %46 : f32 to vector<8x512xf32>
    %48 = arith.select %45, %47, %43 : vector<8x512xi1>, vector<8x512xf32>
    %c8_i32_3 = arith.constant 8 : i32
    %49 = vector.broadcast %c8_i32_3 : i32 to vector<8x512xi32>
    %50 = arith.cmpi eq, %11, %49 : vector<8x512xi32>
    %c8 = arith.constant 8 : index
    %51 = memref.load %arg2[%c8] : memref<100xf32, #tpu.memory_space<smem>>
    %52 = vector.broadcast %51 : f32 to vector<8x512xf32>
    %53 = arith.select %50, %52, %48 : vector<8x512xi1>, vector<8x512xf32>
    %c9_i32 = arith.constant 9 : i32
    %54 = vector.broadcast %c9_i32 : i32 to vector<8x512xi32>
    %55 = arith.cmpi eq, %11, %54 : vector<8x512xi32>
    %c9 = arith.constant 9 : index
    %56 = memref.load %arg2[%c9] : memref<100xf32, #tpu.memory_space<smem>>
    %57 = vector.broadcast %56 : f32 to vector<8x512xf32>
    %58 = arith.select %55, %57, %53 : vector<8x512xi1>, vector<8x512xf32>
    %c10_i32 = arith.constant 10 : i32
    %59 = vector.broadcast %c10_i32 : i32 to vector<8x512xi32>
    %60 = arith.cmpi eq, %11, %59 : vector<8x512xi32>
    %c10 = arith.constant 10 : index
    %61 = memref.load %arg2[%c10] : memref<100xf32, #tpu.memory_space<smem>>
    %62 = vector.broadcast %61 : f32 to vector<8x512xf32>
    %63 = arith.select %60, %62, %58 : vector<8x512xi1>, vector<8x512xf32>
    %c11_i32 = arith.constant 11 : i32
    %64 = vector.broadcast %c11_i32 : i32 to vector<8x512xi32>
    %65 = arith.cmpi eq, %11, %64 : vector<8x512xi32>
    %c11 = arith.constant 11 : index
    %66 = memref.load %arg2[%c11] : memref<100xf32, #tpu.memory_space<smem>>
    %67 = vector.broadcast %66 : f32 to vector<8x512xf32>
    %68 = arith.select %65, %67, %63 : vector<8x512xi1>, vector<8x512xf32>
    %c12_i32 = arith.constant 12 : i32
    %69 = vector.broadcast %c12_i32 : i32 to vector<8x512xi32>
    %70 = arith.cmpi eq, %11, %69 : vector<8x512xi32>
    %c12 = arith.constant 12 : index
    %71 = memref.load %arg2[%c12] : memref<100xf32, #tpu.memory_space<smem>>
    %72 = vector.broadcast %71 : f32 to vector<8x512xf32>
    %73 = arith.select %70, %72, %68 : vector<8x512xi1>, vector<8x512xf32>
    %c13_i32 = arith.constant 13 : i32
    %74 = vector.broadcast %c13_i32 : i32 to vector<8x512xi32>
    %75 = arith.cmpi eq, %11, %74 : vector<8x512xi32>
    %c13 = arith.constant 13 : index
    %76 = memref.load %arg2[%c13] : memref<100xf32, #tpu.memory_space<smem>>
    %77 = vector.broadcast %76 : f32 to vector<8x512xf32>
    %78 = arith.select %75, %77, %73 : vector<8x512xi1>, vector<8x512xf32>
    %c14_i32 = arith.constant 14 : i32
    %79 = vector.broadcast %c14_i32 : i32 to vector<8x512xi32>
    %80 = arith.cmpi eq, %11, %79 : vector<8x512xi32>
    %c14 = arith.constant 14 : index
    %81 = memref.load %arg2[%c14] : memref<100xf32, #tpu.memory_space<smem>>
    %82 = vector.broadcast %81 : f32 to vector<8x512xf32>
    %83 = arith.select %80, %82, %78 : vector<8x512xi1>, vector<8x512xf32>
    %c15_i32 = arith.constant 15 : i32
    %84 = vector.broadcast %c15_i32 : i32 to vector<8x512xi32>
    %85 = arith.cmpi eq, %11, %84 : vector<8x512xi32>
    %c15 = arith.constant 15 : index
    %86 = memref.load %arg2[%c15] : memref<100xf32, #tpu.memory_space<smem>>
    %87 = vector.broadcast %86 : f32 to vector<8x512xf32>
    %88 = arith.select %85, %87, %83 : vector<8x512xi1>, vector<8x512xf32>
    %c16_i32 = arith.constant 16 : i32
    %89 = vector.broadcast %c16_i32 : i32 to vector<8x512xi32>
    %90 = arith.cmpi eq, %11, %89 : vector<8x512xi32>
    %c16 = arith.constant 16 : index
    %91 = memref.load %arg2[%c16] : memref<100xf32, #tpu.memory_space<smem>>
    %92 = vector.broadcast %91 : f32 to vector<8x512xf32>
    %93 = arith.select %90, %92, %88 : vector<8x512xi1>, vector<8x512xf32>
    %c17_i32 = arith.constant 17 : i32
    %94 = vector.broadcast %c17_i32 : i32 to vector<8x512xi32>
    %95 = arith.cmpi eq, %11, %94 : vector<8x512xi32>
    %c17 = arith.constant 17 : index
    %96 = memref.load %arg2[%c17] : memref<100xf32, #tpu.memory_space<smem>>
    %97 = vector.broadcast %96 : f32 to vector<8x512xf32>
    %98 = arith.select %95, %97, %93 : vector<8x512xi1>, vector<8x512xf32>
    %c18_i32 = arith.constant 18 : i32
    %99 = vector.broadcast %c18_i32 : i32 to vector<8x512xi32>
    %100 = arith.cmpi eq, %11, %99 : vector<8x512xi32>
    %c18 = arith.constant 18 : index
    %101 = memref.load %arg2[%c18] : memref<100xf32, #tpu.memory_space<smem>>
    %102 = vector.broadcast %101 : f32 to vector<8x512xf32>
    %103 = arith.select %100, %102, %98 : vector<8x512xi1>, vector<8x512xf32>
    %c19_i32 = arith.constant 19 : i32
    %104 = vector.broadcast %c19_i32 : i32 to vector<8x512xi32>
    %105 = arith.cmpi eq, %11, %104 : vector<8x512xi32>
    %c19 = arith.constant 19 : index
    %106 = memref.load %arg2[%c19] : memref<100xf32, #tpu.memory_space<smem>>
    %107 = vector.broadcast %106 : f32 to vector<8x512xf32>
    %108 = arith.select %105, %107, %103 : vector<8x512xi1>, vector<8x512xf32>
    %c20_i32 = arith.constant 20 : i32
    %109 = vector.broadcast %c20_i32 : i32 to vector<8x512xi32>
    %110 = arith.cmpi eq, %11, %109 : vector<8x512xi32>
    %c20 = arith.constant 20 : index
    %111 = memref.load %arg2[%c20] : memref<100xf32, #tpu.memory_space<smem>>
    %112 = vector.broadcast %111 : f32 to vector<8x512xf32>
    %113 = arith.select %110, %112, %108 : vector<8x512xi1>, vector<8x512xf32>
    %c21_i32 = arith.constant 21 : i32
    %114 = vector.broadcast %c21_i32 : i32 to vector<8x512xi32>
    %115 = arith.cmpi eq, %11, %114 : vector<8x512xi32>
    %c21 = arith.constant 21 : index
    %116 = memref.load %arg2[%c21] : memref<100xf32, #tpu.memory_space<smem>>
    %117 = vector.broadcast %116 : f32 to vector<8x512xf32>
    %118 = arith.select %115, %117, %113 : vector<8x512xi1>, vector<8x512xf32>
    %c22_i32 = arith.constant 22 : i32
    %119 = vector.broadcast %c22_i32 : i32 to vector<8x512xi32>
    %120 = arith.cmpi eq, %11, %119 : vector<8x512xi32>
    %c22 = arith.constant 22 : index
    %121 = memref.load %arg2[%c22] : memref<100xf32, #tpu.memory_space<smem>>
    %122 = vector.broadcast %121 : f32 to vector<8x512xf32>
    %123 = arith.select %120, %122, %118 : vector<8x512xi1>, vector<8x512xf32>
    %c23_i32 = arith.constant 23 : i32
    %124 = vector.broadcast %c23_i32 : i32 to vector<8x512xi32>
    %125 = arith.cmpi eq, %11, %124 : vector<8x512xi32>
    %c23 = arith.constant 23 : index
    %126 = memref.load %arg2[%c23] : memref<100xf32, #tpu.memory_space<smem>>
    %127 = vector.broadcast %126 : f32 to vector<8x512xf32>
    %128 = arith.select %125, %127, %123 : vector<8x512xi1>, vector<8x512xf32>
    %c24_i32 = arith.constant 24 : i32
    %129 = vector.broadcast %c24_i32 : i32 to vector<8x512xi32>
    %130 = arith.cmpi eq, %11, %129 : vector<8x512xi32>
    %c24 = arith.constant 24 : index
    %131 = memref.load %arg2[%c24] : memref<100xf32, #tpu.memory_space<smem>>
    %132 = vector.broadcast %131 : f32 to vector<8x512xf32>
    %133 = arith.select %130, %132, %128 : vector<8x512xi1>, vector<8x512xf32>
    %c25_i32 = arith.constant 25 : i32
    %134 = vector.broadcast %c25_i32 : i32 to vector<8x512xi32>
    %135 = arith.cmpi eq, %11, %134 : vector<8x512xi32>
    %c25 = arith.constant 25 : index
    %136 = memref.load %arg2[%c25] : memref<100xf32, #tpu.memory_space<smem>>
    %137 = vector.broadcast %136 : f32 to vector<8x512xf32>
    %138 = arith.select %135, %137, %133 : vector<8x512xi1>, vector<8x512xf32>
    %c26_i32 = arith.constant 26 : i32
    %139 = vector.broadcast %c26_i32 : i32 to vector<8x512xi32>
    %140 = arith.cmpi eq, %11, %139 : vector<8x512xi32>
    %c26 = arith.constant 26 : index
    %141 = memref.load %arg2[%c26] : memref<100xf32, #tpu.memory_space<smem>>
    %142 = vector.broadcast %141 : f32 to vector<8x512xf32>
    %143 = arith.select %140, %142, %138 : vector<8x512xi1>, vector<8x512xf32>
    %c27_i32 = arith.constant 27 : i32
    %144 = vector.broadcast %c27_i32 : i32 to vector<8x512xi32>
    %145 = arith.cmpi eq, %11, %144 : vector<8x512xi32>
    %c27 = arith.constant 27 : index
    %146 = memref.load %arg2[%c27] : memref<100xf32, #tpu.memory_space<smem>>
    %147 = vector.broadcast %146 : f32 to vector<8x512xf32>
    %148 = arith.select %145, %147, %143 : vector<8x512xi1>, vector<8x512xf32>
    %c28_i32 = arith.constant 28 : i32
    %149 = vector.broadcast %c28_i32 : i32 to vector<8x512xi32>
    %150 = arith.cmpi eq, %11, %149 : vector<8x512xi32>
    %c28 = arith.constant 28 : index
    %151 = memref.load %arg2[%c28] : memref<100xf32, #tpu.memory_space<smem>>
    %152 = vector.broadcast %151 : f32 to vector<8x512xf32>
    %153 = arith.select %150, %152, %148 : vector<8x512xi1>, vector<8x512xf32>
    %c29_i32 = arith.constant 29 : i32
    %154 = vector.broadcast %c29_i32 : i32 to vector<8x512xi32>
    %155 = arith.cmpi eq, %11, %154 : vector<8x512xi32>
    %c29 = arith.constant 29 : index
    %156 = memref.load %arg2[%c29] : memref<100xf32, #tpu.memory_space<smem>>
    %157 = vector.broadcast %156 : f32 to vector<8x512xf32>
    %158 = arith.select %155, %157, %153 : vector<8x512xi1>, vector<8x512xf32>
    %c30_i32 = arith.constant 30 : i32
    %159 = vector.broadcast %c30_i32 : i32 to vector<8x512xi32>
    %160 = arith.cmpi eq, %11, %159 : vector<8x512xi32>
    %c30 = arith.constant 30 : index
    %161 = memref.load %arg2[%c30] : memref<100xf32, #tpu.memory_space<smem>>
    %162 = vector.broadcast %161 : f32 to vector<8x512xf32>
    %163 = arith.select %160, %162, %158 : vector<8x512xi1>, vector<8x512xf32>
    %c31_i32 = arith.constant 31 : i32
    %164 = vector.broadcast %c31_i32 : i32 to vector<8x512xi32>
    %165 = arith.cmpi eq, %11, %164 : vector<8x512xi32>
    %c31 = arith.constant 31 : index
    %166 = memref.load %arg2[%c31] : memref<100xf32, #tpu.memory_space<smem>>
    %167 = vector.broadcast %166 : f32 to vector<8x512xf32>
    %168 = arith.select %165, %167, %163 : vector<8x512xi1>, vector<8x512xf32>
    %c32_i32 = arith.constant 32 : i32
    %169 = vector.broadcast %c32_i32 : i32 to vector<8x512xi32>
    %170 = arith.cmpi eq, %11, %169 : vector<8x512xi32>
    %c32 = arith.constant 32 : index
    %171 = memref.load %arg2[%c32] : memref<100xf32, #tpu.memory_space<smem>>
    %172 = vector.broadcast %171 : f32 to vector<8x512xf32>
    %173 = arith.select %170, %172, %168 : vector<8x512xi1>, vector<8x512xf32>
    %c33_i32 = arith.constant 33 : i32
    %174 = vector.broadcast %c33_i32 : i32 to vector<8x512xi32>
    %175 = arith.cmpi eq, %11, %174 : vector<8x512xi32>
    %c33 = arith.constant 33 : index
    %176 = memref.load %arg2[%c33] : memref<100xf32, #tpu.memory_space<smem>>
    %177 = vector.broadcast %176 : f32 to vector<8x512xf32>
    %178 = arith.select %175, %177, %173 : vector<8x512xi1>, vector<8x512xf32>
    %c34_i32 = arith.constant 34 : i32
    %179 = vector.broadcast %c34_i32 : i32 to vector<8x512xi32>
    %180 = arith.cmpi eq, %11, %179 : vector<8x512xi32>
    %c34 = arith.constant 34 : index
    %181 = memref.load %arg2[%c34] : memref<100xf32, #tpu.memory_space<smem>>
    %182 = vector.broadcast %181 : f32 to vector<8x512xf32>
    %183 = arith.select %180, %182, %178 : vector<8x512xi1>, vector<8x512xf32>
    %c35_i32 = arith.constant 35 : i32
    %184 = vector.broadcast %c35_i32 : i32 to vector<8x512xi32>
    %185 = arith.cmpi eq, %11, %184 : vector<8x512xi32>
    %c35 = arith.constant 35 : index
    %186 = memref.load %arg2[%c35] : memref<100xf32, #tpu.memory_space<smem>>
    %187 = vector.broadcast %186 : f32 to vector<8x512xf32>
    %188 = arith.select %185, %187, %183 : vector<8x512xi1>, vector<8x512xf32>
    %c36_i32 = arith.constant 36 : i32
    %189 = vector.broadcast %c36_i32 : i32 to vector<8x512xi32>
    %190 = arith.cmpi eq, %11, %189 : vector<8x512xi32>
    %c36 = arith.constant 36 : index
    %191 = memref.load %arg2[%c36] : memref<100xf32, #tpu.memory_space<smem>>
    %192 = vector.broadcast %191 : f32 to vector<8x512xf32>
    %193 = arith.select %190, %192, %188 : vector<8x512xi1>, vector<8x512xf32>
    %c37_i32 = arith.constant 37 : i32
    %194 = vector.broadcast %c37_i32 : i32 to vector<8x512xi32>
    %195 = arith.cmpi eq, %11, %194 : vector<8x512xi32>
    %c37 = arith.constant 37 : index
    %196 = memref.load %arg2[%c37] : memref<100xf32, #tpu.memory_space<smem>>
    %197 = vector.broadcast %196 : f32 to vector<8x512xf32>
    %198 = arith.select %195, %197, %193 : vector<8x512xi1>, vector<8x512xf32>
    %c38_i32 = arith.constant 38 : i32
    %199 = vector.broadcast %c38_i32 : i32 to vector<8x512xi32>
    %200 = arith.cmpi eq, %11, %199 : vector<8x512xi32>
    %c38 = arith.constant 38 : index
    %201 = memref.load %arg2[%c38] : memref<100xf32, #tpu.memory_space<smem>>
    %202 = vector.broadcast %201 : f32 to vector<8x512xf32>
    %203 = arith.select %200, %202, %198 : vector<8x512xi1>, vector<8x512xf32>
    %c39_i32 = arith.constant 39 : i32
    %204 = vector.broadcast %c39_i32 : i32 to vector<8x512xi32>
    %205 = arith.cmpi eq, %11, %204 : vector<8x512xi32>
    %c39 = arith.constant 39 : index
    %206 = memref.load %arg2[%c39] : memref<100xf32, #tpu.memory_space<smem>>
    %207 = vector.broadcast %206 : f32 to vector<8x512xf32>
    %208 = arith.select %205, %207, %203 : vector<8x512xi1>, vector<8x512xf32>
    %c40_i32 = arith.constant 40 : i32
    %209 = vector.broadcast %c40_i32 : i32 to vector<8x512xi32>
    %210 = arith.cmpi eq, %11, %209 : vector<8x512xi32>
    %c40 = arith.constant 40 : index
    %211 = memref.load %arg2[%c40] : memref<100xf32, #tpu.memory_space<smem>>
    %212 = vector.broadcast %211 : f32 to vector<8x512xf32>
    %213 = arith.select %210, %212, %208 : vector<8x512xi1>, vector<8x512xf32>
    %c41_i32 = arith.constant 41 : i32
    %214 = vector.broadcast %c41_i32 : i32 to vector<8x512xi32>
    %215 = arith.cmpi eq, %11, %214 : vector<8x512xi32>
    %c41 = arith.constant 41 : index
    %216 = memref.load %arg2[%c41] : memref<100xf32, #tpu.memory_space<smem>>
    %217 = vector.broadcast %216 : f32 to vector<8x512xf32>
    %218 = arith.select %215, %217, %213 : vector<8x512xi1>, vector<8x512xf32>
    %c42_i32 = arith.constant 42 : i32
    %219 = vector.broadcast %c42_i32 : i32 to vector<8x512xi32>
    %220 = arith.cmpi eq, %11, %219 : vector<8x512xi32>
    %c42 = arith.constant 42 : index
    %221 = memref.load %arg2[%c42] : memref<100xf32, #tpu.memory_space<smem>>
    %222 = vector.broadcast %221 : f32 to vector<8x512xf32>
    %223 = arith.select %220, %222, %218 : vector<8x512xi1>, vector<8x512xf32>
    %c43_i32 = arith.constant 43 : i32
    %224 = vector.broadcast %c43_i32 : i32 to vector<8x512xi32>
    %225 = arith.cmpi eq, %11, %224 : vector<8x512xi32>
    %c43 = arith.constant 43 : index
    %226 = memref.load %arg2[%c43] : memref<100xf32, #tpu.memory_space<smem>>
    %227 = vector.broadcast %226 : f32 to vector<8x512xf32>
    %228 = arith.select %225, %227, %223 : vector<8x512xi1>, vector<8x512xf32>
    %c44_i32 = arith.constant 44 : i32
    %229 = vector.broadcast %c44_i32 : i32 to vector<8x512xi32>
    %230 = arith.cmpi eq, %11, %229 : vector<8x512xi32>
    %c44 = arith.constant 44 : index
    %231 = memref.load %arg2[%c44] : memref<100xf32, #tpu.memory_space<smem>>
    %232 = vector.broadcast %231 : f32 to vector<8x512xf32>
    %233 = arith.select %230, %232, %228 : vector<8x512xi1>, vector<8x512xf32>
    %c45_i32 = arith.constant 45 : i32
    %234 = vector.broadcast %c45_i32 : i32 to vector<8x512xi32>
    %235 = arith.cmpi eq, %11, %234 : vector<8x512xi32>
    %c45 = arith.constant 45 : index
    %236 = memref.load %arg2[%c45] : memref<100xf32, #tpu.memory_space<smem>>
    %237 = vector.broadcast %236 : f32 to vector<8x512xf32>
    %238 = arith.select %235, %237, %233 : vector<8x512xi1>, vector<8x512xf32>
    %c46_i32 = arith.constant 46 : i32
    %239 = vector.broadcast %c46_i32 : i32 to vector<8x512xi32>
    %240 = arith.cmpi eq, %11, %239 : vector<8x512xi32>
    %c46 = arith.constant 46 : index
    %241 = memref.load %arg2[%c46] : memref<100xf32, #tpu.memory_space<smem>>
    %242 = vector.broadcast %241 : f32 to vector<8x512xf32>
    %243 = arith.select %240, %242, %238 : vector<8x512xi1>, vector<8x512xf32>
    %c47_i32 = arith.constant 47 : i32
    %244 = vector.broadcast %c47_i32 : i32 to vector<8x512xi32>
    %245 = arith.cmpi eq, %11, %244 : vector<8x512xi32>
    %c47 = arith.constant 47 : index
    %246 = memref.load %arg2[%c47] : memref<100xf32, #tpu.memory_space<smem>>
    %247 = vector.broadcast %246 : f32 to vector<8x512xf32>
    %248 = arith.select %245, %247, %243 : vector<8x512xi1>, vector<8x512xf32>
    %c48_i32 = arith.constant 48 : i32
    %249 = vector.broadcast %c48_i32 : i32 to vector<8x512xi32>
    %250 = arith.cmpi eq, %11, %249 : vector<8x512xi32>
    %c48 = arith.constant 48 : index
    %251 = memref.load %arg2[%c48] : memref<100xf32, #tpu.memory_space<smem>>
    %252 = vector.broadcast %251 : f32 to vector<8x512xf32>
    %253 = arith.select %250, %252, %248 : vector<8x512xi1>, vector<8x512xf32>
    %c49_i32 = arith.constant 49 : i32
    %254 = vector.broadcast %c49_i32 : i32 to vector<8x512xi32>
    %255 = arith.cmpi eq, %11, %254 : vector<8x512xi32>
    %c49 = arith.constant 49 : index
    %256 = memref.load %arg2[%c49] : memref<100xf32, #tpu.memory_space<smem>>
    %257 = vector.broadcast %256 : f32 to vector<8x512xf32>
    %258 = arith.select %255, %257, %253 : vector<8x512xi1>, vector<8x512xf32>
    %c50_i32 = arith.constant 50 : i32
    %259 = vector.broadcast %c50_i32 : i32 to vector<8x512xi32>
    %260 = arith.cmpi eq, %11, %259 : vector<8x512xi32>
    %c50 = arith.constant 50 : index
    %261 = memref.load %arg2[%c50] : memref<100xf32, #tpu.memory_space<smem>>
    %262 = vector.broadcast %261 : f32 to vector<8x512xf32>
    %263 = arith.select %260, %262, %258 : vector<8x512xi1>, vector<8x512xf32>
    %c51_i32 = arith.constant 51 : i32
    %264 = vector.broadcast %c51_i32 : i32 to vector<8x512xi32>
    %265 = arith.cmpi eq, %11, %264 : vector<8x512xi32>
    %c51 = arith.constant 51 : index
    %266 = memref.load %arg2[%c51] : memref<100xf32, #tpu.memory_space<smem>>
    %267 = vector.broadcast %266 : f32 to vector<8x512xf32>
    %268 = arith.select %265, %267, %263 : vector<8x512xi1>, vector<8x512xf32>
    %c52_i32 = arith.constant 52 : i32
    %269 = vector.broadcast %c52_i32 : i32 to vector<8x512xi32>
    %270 = arith.cmpi eq, %11, %269 : vector<8x512xi32>
    %c52 = arith.constant 52 : index
    %271 = memref.load %arg2[%c52] : memref<100xf32, #tpu.memory_space<smem>>
    %272 = vector.broadcast %271 : f32 to vector<8x512xf32>
    %273 = arith.select %270, %272, %268 : vector<8x512xi1>, vector<8x512xf32>
    %c53_i32 = arith.constant 53 : i32
    %274 = vector.broadcast %c53_i32 : i32 to vector<8x512xi32>
    %275 = arith.cmpi eq, %11, %274 : vector<8x512xi32>
    %c53 = arith.constant 53 : index
    %276 = memref.load %arg2[%c53] : memref<100xf32, #tpu.memory_space<smem>>
    %277 = vector.broadcast %276 : f32 to vector<8x512xf32>
    %278 = arith.select %275, %277, %273 : vector<8x512xi1>, vector<8x512xf32>
    %c54_i32 = arith.constant 54 : i32
    %279 = vector.broadcast %c54_i32 : i32 to vector<8x512xi32>
    %280 = arith.cmpi eq, %11, %279 : vector<8x512xi32>
    %c54 = arith.constant 54 : index
    %281 = memref.load %arg2[%c54] : memref<100xf32, #tpu.memory_space<smem>>
    %282 = vector.broadcast %281 : f32 to vector<8x512xf32>
    %283 = arith.select %280, %282, %278 : vector<8x512xi1>, vector<8x512xf32>
    %c55_i32 = arith.constant 55 : i32
    %284 = vector.broadcast %c55_i32 : i32 to vector<8x512xi32>
    %285 = arith.cmpi eq, %11, %284 : vector<8x512xi32>
    %c55 = arith.constant 55 : index
    %286 = memref.load %arg2[%c55] : memref<100xf32, #tpu.memory_space<smem>>
    %287 = vector.broadcast %286 : f32 to vector<8x512xf32>
    %288 = arith.select %285, %287, %283 : vector<8x512xi1>, vector<8x512xf32>
    %c56_i32 = arith.constant 56 : i32
    %289 = vector.broadcast %c56_i32 : i32 to vector<8x512xi32>
    %290 = arith.cmpi eq, %11, %289 : vector<8x512xi32>
    %c56 = arith.constant 56 : index
    %291 = memref.load %arg2[%c56] : memref<100xf32, #tpu.memory_space<smem>>
    %292 = vector.broadcast %291 : f32 to vector<8x512xf32>
    %293 = arith.select %290, %292, %288 : vector<8x512xi1>, vector<8x512xf32>
    %c57_i32 = arith.constant 57 : i32
    %294 = vector.broadcast %c57_i32 : i32 to vector<8x512xi32>
    %295 = arith.cmpi eq, %11, %294 : vector<8x512xi32>
    %c57 = arith.constant 57 : index
    %296 = memref.load %arg2[%c57] : memref<100xf32, #tpu.memory_space<smem>>
    %297 = vector.broadcast %296 : f32 to vector<8x512xf32>
    %298 = arith.select %295, %297, %293 : vector<8x512xi1>, vector<8x512xf32>
    %c58_i32 = arith.constant 58 : i32
    %299 = vector.broadcast %c58_i32 : i32 to vector<8x512xi32>
    %300 = arith.cmpi eq, %11, %299 : vector<8x512xi32>
    %c58 = arith.constant 58 : index
    %301 = memref.load %arg2[%c58] : memref<100xf32, #tpu.memory_space<smem>>
    %302 = vector.broadcast %301 : f32 to vector<8x512xf32>
    %303 = arith.select %300, %302, %298 : vector<8x512xi1>, vector<8x512xf32>
    %c59_i32 = arith.constant 59 : i32
    %304 = vector.broadcast %c59_i32 : i32 to vector<8x512xi32>
    %305 = arith.cmpi eq, %11, %304 : vector<8x512xi32>
    %c59 = arith.constant 59 : index
    %306 = memref.load %arg2[%c59] : memref<100xf32, #tpu.memory_space<smem>>
    %307 = vector.broadcast %306 : f32 to vector<8x512xf32>
    %308 = arith.select %305, %307, %303 : vector<8x512xi1>, vector<8x512xf32>
    %c60_i32 = arith.constant 60 : i32
    %309 = vector.broadcast %c60_i32 : i32 to vector<8x512xi32>
    %310 = arith.cmpi eq, %11, %309 : vector<8x512xi32>
    %c60 = arith.constant 60 : index
    %311 = memref.load %arg2[%c60] : memref<100xf32, #tpu.memory_space<smem>>
    %312 = vector.broadcast %311 : f32 to vector<8x512xf32>
    %313 = arith.select %310, %312, %308 : vector<8x512xi1>, vector<8x512xf32>
    %c61_i32 = arith.constant 61 : i32
    %314 = vector.broadcast %c61_i32 : i32 to vector<8x512xi32>
    %315 = arith.cmpi eq, %11, %314 : vector<8x512xi32>
    %c61 = arith.constant 61 : index
    %316 = memref.load %arg2[%c61] : memref<100xf32, #tpu.memory_space<smem>>
    %317 = vector.broadcast %316 : f32 to vector<8x512xf32>
    %318 = arith.select %315, %317, %313 : vector<8x512xi1>, vector<8x512xf32>
    %c62_i32 = arith.constant 62 : i32
    %319 = vector.broadcast %c62_i32 : i32 to vector<8x512xi32>
    %320 = arith.cmpi eq, %11, %319 : vector<8x512xi32>
    %c62 = arith.constant 62 : index
    %321 = memref.load %arg2[%c62] : memref<100xf32, #tpu.memory_space<smem>>
    %322 = vector.broadcast %321 : f32 to vector<8x512xf32>
    %323 = arith.select %320, %322, %318 : vector<8x512xi1>, vector<8x512xf32>
    %c63_i32 = arith.constant 63 : i32
    %324 = vector.broadcast %c63_i32 : i32 to vector<8x512xi32>
    %325 = arith.cmpi eq, %11, %324 : vector<8x512xi32>
    %c63 = arith.constant 63 : index
    %326 = memref.load %arg2[%c63] : memref<100xf32, #tpu.memory_space<smem>>
    %327 = vector.broadcast %326 : f32 to vector<8x512xf32>
    %328 = arith.select %325, %327, %323 : vector<8x512xi1>, vector<8x512xf32>
    %c64_i32 = arith.constant 64 : i32
    %329 = vector.broadcast %c64_i32 : i32 to vector<8x512xi32>
    %330 = arith.cmpi eq, %11, %329 : vector<8x512xi32>
    %c64 = arith.constant 64 : index
    %331 = memref.load %arg2[%c64] : memref<100xf32, #tpu.memory_space<smem>>
    %332 = vector.broadcast %331 : f32 to vector<8x512xf32>
    %333 = arith.select %330, %332, %328 : vector<8x512xi1>, vector<8x512xf32>
    %c65_i32 = arith.constant 65 : i32
    %334 = vector.broadcast %c65_i32 : i32 to vector<8x512xi32>
    %335 = arith.cmpi eq, %11, %334 : vector<8x512xi32>
    %c65 = arith.constant 65 : index
    %336 = memref.load %arg2[%c65] : memref<100xf32, #tpu.memory_space<smem>>
    %337 = vector.broadcast %336 : f32 to vector<8x512xf32>
    %338 = arith.select %335, %337, %333 : vector<8x512xi1>, vector<8x512xf32>
    %c66_i32 = arith.constant 66 : i32
    %339 = vector.broadcast %c66_i32 : i32 to vector<8x512xi32>
    %340 = arith.cmpi eq, %11, %339 : vector<8x512xi32>
    %c66 = arith.constant 66 : index
    %341 = memref.load %arg2[%c66] : memref<100xf32, #tpu.memory_space<smem>>
    %342 = vector.broadcast %341 : f32 to vector<8x512xf32>
    %343 = arith.select %340, %342, %338 : vector<8x512xi1>, vector<8x512xf32>
    %c67_i32 = arith.constant 67 : i32
    %344 = vector.broadcast %c67_i32 : i32 to vector<8x512xi32>
    %345 = arith.cmpi eq, %11, %344 : vector<8x512xi32>
    %c67 = arith.constant 67 : index
    %346 = memref.load %arg2[%c67] : memref<100xf32, #tpu.memory_space<smem>>
    %347 = vector.broadcast %346 : f32 to vector<8x512xf32>
    %348 = arith.select %345, %347, %343 : vector<8x512xi1>, vector<8x512xf32>
    %c68_i32 = arith.constant 68 : i32
    %349 = vector.broadcast %c68_i32 : i32 to vector<8x512xi32>
    %350 = arith.cmpi eq, %11, %349 : vector<8x512xi32>
    %c68 = arith.constant 68 : index
    %351 = memref.load %arg2[%c68] : memref<100xf32, #tpu.memory_space<smem>>
    %352 = vector.broadcast %351 : f32 to vector<8x512xf32>
    %353 = arith.select %350, %352, %348 : vector<8x512xi1>, vector<8x512xf32>
    %c69_i32 = arith.constant 69 : i32
    %354 = vector.broadcast %c69_i32 : i32 to vector<8x512xi32>
    %355 = arith.cmpi eq, %11, %354 : vector<8x512xi32>
    %c69 = arith.constant 69 : index
    %356 = memref.load %arg2[%c69] : memref<100xf32, #tpu.memory_space<smem>>
    %357 = vector.broadcast %356 : f32 to vector<8x512xf32>
    %358 = arith.select %355, %357, %353 : vector<8x512xi1>, vector<8x512xf32>
    %c70_i32 = arith.constant 70 : i32
    %359 = vector.broadcast %c70_i32 : i32 to vector<8x512xi32>
    %360 = arith.cmpi eq, %11, %359 : vector<8x512xi32>
    %c70 = arith.constant 70 : index
    %361 = memref.load %arg2[%c70] : memref<100xf32, #tpu.memory_space<smem>>
    %362 = vector.broadcast %361 : f32 to vector<8x512xf32>
    %363 = arith.select %360, %362, %358 : vector<8x512xi1>, vector<8x512xf32>
    %c71_i32 = arith.constant 71 : i32
    %364 = vector.broadcast %c71_i32 : i32 to vector<8x512xi32>
    %365 = arith.cmpi eq, %11, %364 : vector<8x512xi32>
    %c71 = arith.constant 71 : index
    %366 = memref.load %arg2[%c71] : memref<100xf32, #tpu.memory_space<smem>>
    %367 = vector.broadcast %366 : f32 to vector<8x512xf32>
    %368 = arith.select %365, %367, %363 : vector<8x512xi1>, vector<8x512xf32>
    %c72_i32 = arith.constant 72 : i32
    %369 = vector.broadcast %c72_i32 : i32 to vector<8x512xi32>
    %370 = arith.cmpi eq, %11, %369 : vector<8x512xi32>
    %c72 = arith.constant 72 : index
    %371 = memref.load %arg2[%c72] : memref<100xf32, #tpu.memory_space<smem>>
    %372 = vector.broadcast %371 : f32 to vector<8x512xf32>
    %373 = arith.select %370, %372, %368 : vector<8x512xi1>, vector<8x512xf32>
    %c73_i32 = arith.constant 73 : i32
    %374 = vector.broadcast %c73_i32 : i32 to vector<8x512xi32>
    %375 = arith.cmpi eq, %11, %374 : vector<8x512xi32>
    %c73 = arith.constant 73 : index
    %376 = memref.load %arg2[%c73] : memref<100xf32, #tpu.memory_space<smem>>
    %377 = vector.broadcast %376 : f32 to vector<8x512xf32>
    %378 = arith.select %375, %377, %373 : vector<8x512xi1>, vector<8x512xf32>
    %c74_i32 = arith.constant 74 : i32
    %379 = vector.broadcast %c74_i32 : i32 to vector<8x512xi32>
    %380 = arith.cmpi eq, %11, %379 : vector<8x512xi32>
    %c74 = arith.constant 74 : index
    %381 = memref.load %arg2[%c74] : memref<100xf32, #tpu.memory_space<smem>>
    %382 = vector.broadcast %381 : f32 to vector<8x512xf32>
    %383 = arith.select %380, %382, %378 : vector<8x512xi1>, vector<8x512xf32>
    %c75_i32 = arith.constant 75 : i32
    %384 = vector.broadcast %c75_i32 : i32 to vector<8x512xi32>
    %385 = arith.cmpi eq, %11, %384 : vector<8x512xi32>
    %c75 = arith.constant 75 : index
    %386 = memref.load %arg2[%c75] : memref<100xf32, #tpu.memory_space<smem>>
    %387 = vector.broadcast %386 : f32 to vector<8x512xf32>
    %388 = arith.select %385, %387, %383 : vector<8x512xi1>, vector<8x512xf32>
    %c76_i32 = arith.constant 76 : i32
    %389 = vector.broadcast %c76_i32 : i32 to vector<8x512xi32>
    %390 = arith.cmpi eq, %11, %389 : vector<8x512xi32>
    %c76 = arith.constant 76 : index
    %391 = memref.load %arg2[%c76] : memref<100xf32, #tpu.memory_space<smem>>
    %392 = vector.broadcast %391 : f32 to vector<8x512xf32>
    %393 = arith.select %390, %392, %388 : vector<8x512xi1>, vector<8x512xf32>
    %c77_i32 = arith.constant 77 : i32
    %394 = vector.broadcast %c77_i32 : i32 to vector<8x512xi32>
    %395 = arith.cmpi eq, %11, %394 : vector<8x512xi32>
    %c77 = arith.constant 77 : index
    %396 = memref.load %arg2[%c77] : memref<100xf32, #tpu.memory_space<smem>>
    %397 = vector.broadcast %396 : f32 to vector<8x512xf32>
    %398 = arith.select %395, %397, %393 : vector<8x512xi1>, vector<8x512xf32>
    %c78_i32 = arith.constant 78 : i32
    %399 = vector.broadcast %c78_i32 : i32 to vector<8x512xi32>
    %400 = arith.cmpi eq, %11, %399 : vector<8x512xi32>
    %c78 = arith.constant 78 : index
    %401 = memref.load %arg2[%c78] : memref<100xf32, #tpu.memory_space<smem>>
    %402 = vector.broadcast %401 : f32 to vector<8x512xf32>
    %403 = arith.select %400, %402, %398 : vector<8x512xi1>, vector<8x512xf32>
    %c79_i32 = arith.constant 79 : i32
    %404 = vector.broadcast %c79_i32 : i32 to vector<8x512xi32>
    %405 = arith.cmpi eq, %11, %404 : vector<8x512xi32>
    %c79 = arith.constant 79 : index
    %406 = memref.load %arg2[%c79] : memref<100xf32, #tpu.memory_space<smem>>
    %407 = vector.broadcast %406 : f32 to vector<8x512xf32>
    %408 = arith.select %405, %407, %403 : vector<8x512xi1>, vector<8x512xf32>
    %c80_i32 = arith.constant 80 : i32
    %409 = vector.broadcast %c80_i32 : i32 to vector<8x512xi32>
    %410 = arith.cmpi eq, %11, %409 : vector<8x512xi32>
    %c80 = arith.constant 80 : index
    %411 = memref.load %arg2[%c80] : memref<100xf32, #tpu.memory_space<smem>>
    %412 = vector.broadcast %411 : f32 to vector<8x512xf32>
    %413 = arith.select %410, %412, %408 : vector<8x512xi1>, vector<8x512xf32>
    %c81_i32 = arith.constant 81 : i32
    %414 = vector.broadcast %c81_i32 : i32 to vector<8x512xi32>
    %415 = arith.cmpi eq, %11, %414 : vector<8x512xi32>
    %c81 = arith.constant 81 : index
    %416 = memref.load %arg2[%c81] : memref<100xf32, #tpu.memory_space<smem>>
    %417 = vector.broadcast %416 : f32 to vector<8x512xf32>
    %418 = arith.select %415, %417, %413 : vector<8x512xi1>, vector<8x512xf32>
    %c82_i32 = arith.constant 82 : i32
    %419 = vector.broadcast %c82_i32 : i32 to vector<8x512xi32>
    %420 = arith.cmpi eq, %11, %419 : vector<8x512xi32>
    %c82 = arith.constant 82 : index
    %421 = memref.load %arg2[%c82] : memref<100xf32, #tpu.memory_space<smem>>
    %422 = vector.broadcast %421 : f32 to vector<8x512xf32>
    %423 = arith.select %420, %422, %418 : vector<8x512xi1>, vector<8x512xf32>
    %c83_i32 = arith.constant 83 : i32
    %424 = vector.broadcast %c83_i32 : i32 to vector<8x512xi32>
    %425 = arith.cmpi eq, %11, %424 : vector<8x512xi32>
    %c83 = arith.constant 83 : index
    %426 = memref.load %arg2[%c83] : memref<100xf32, #tpu.memory_space<smem>>
    %427 = vector.broadcast %426 : f32 to vector<8x512xf32>
    %428 = arith.select %425, %427, %423 : vector<8x512xi1>, vector<8x512xf32>
    %c84_i32 = arith.constant 84 : i32
    %429 = vector.broadcast %c84_i32 : i32 to vector<8x512xi32>
    %430 = arith.cmpi eq, %11, %429 : vector<8x512xi32>
    %c84 = arith.constant 84 : index
    %431 = memref.load %arg2[%c84] : memref<100xf32, #tpu.memory_space<smem>>
    %432 = vector.broadcast %431 : f32 to vector<8x512xf32>
    %433 = arith.select %430, %432, %428 : vector<8x512xi1>, vector<8x512xf32>
    %c85_i32 = arith.constant 85 : i32
    %434 = vector.broadcast %c85_i32 : i32 to vector<8x512xi32>
    %435 = arith.cmpi eq, %11, %434 : vector<8x512xi32>
    %c85 = arith.constant 85 : index
    %436 = memref.load %arg2[%c85] : memref<100xf32, #tpu.memory_space<smem>>
    %437 = vector.broadcast %436 : f32 to vector<8x512xf32>
    %438 = arith.select %435, %437, %433 : vector<8x512xi1>, vector<8x512xf32>
    %c86_i32 = arith.constant 86 : i32
    %439 = vector.broadcast %c86_i32 : i32 to vector<8x512xi32>
    %440 = arith.cmpi eq, %11, %439 : vector<8x512xi32>
    %c86 = arith.constant 86 : index
    %441 = memref.load %arg2[%c86] : memref<100xf32, #tpu.memory_space<smem>>
    %442 = vector.broadcast %441 : f32 to vector<8x512xf32>
    %443 = arith.select %440, %442, %438 : vector<8x512xi1>, vector<8x512xf32>
    %c87_i32 = arith.constant 87 : i32
    %444 = vector.broadcast %c87_i32 : i32 to vector<8x512xi32>
    %445 = arith.cmpi eq, %11, %444 : vector<8x512xi32>
    %c87 = arith.constant 87 : index
    %446 = memref.load %arg2[%c87] : memref<100xf32, #tpu.memory_space<smem>>
    %447 = vector.broadcast %446 : f32 to vector<8x512xf32>
    %448 = arith.select %445, %447, %443 : vector<8x512xi1>, vector<8x512xf32>
    %c88_i32 = arith.constant 88 : i32
    %449 = vector.broadcast %c88_i32 : i32 to vector<8x512xi32>
    %450 = arith.cmpi eq, %11, %449 : vector<8x512xi32>
    %c88 = arith.constant 88 : index
    %451 = memref.load %arg2[%c88] : memref<100xf32, #tpu.memory_space<smem>>
    %452 = vector.broadcast %451 : f32 to vector<8x512xf32>
    %453 = arith.select %450, %452, %448 : vector<8x512xi1>, vector<8x512xf32>
    %c89_i32 = arith.constant 89 : i32
    %454 = vector.broadcast %c89_i32 : i32 to vector<8x512xi32>
    %455 = arith.cmpi eq, %11, %454 : vector<8x512xi32>
    %c89 = arith.constant 89 : index
    %456 = memref.load %arg2[%c89] : memref<100xf32, #tpu.memory_space<smem>>
    %457 = vector.broadcast %456 : f32 to vector<8x512xf32>
    %458 = arith.select %455, %457, %453 : vector<8x512xi1>, vector<8x512xf32>
    %c90_i32 = arith.constant 90 : i32
    %459 = vector.broadcast %c90_i32 : i32 to vector<8x512xi32>
    %460 = arith.cmpi eq, %11, %459 : vector<8x512xi32>
    %c90 = arith.constant 90 : index
    %461 = memref.load %arg2[%c90] : memref<100xf32, #tpu.memory_space<smem>>
    %462 = vector.broadcast %461 : f32 to vector<8x512xf32>
    %463 = arith.select %460, %462, %458 : vector<8x512xi1>, vector<8x512xf32>
    %c91_i32 = arith.constant 91 : i32
    %464 = vector.broadcast %c91_i32 : i32 to vector<8x512xi32>
    %465 = arith.cmpi eq, %11, %464 : vector<8x512xi32>
    %c91 = arith.constant 91 : index
    %466 = memref.load %arg2[%c91] : memref<100xf32, #tpu.memory_space<smem>>
    %467 = vector.broadcast %466 : f32 to vector<8x512xf32>
    %468 = arith.select %465, %467, %463 : vector<8x512xi1>, vector<8x512xf32>
    %c92_i32 = arith.constant 92 : i32
    %469 = vector.broadcast %c92_i32 : i32 to vector<8x512xi32>
    %470 = arith.cmpi eq, %11, %469 : vector<8x512xi32>
    %c92 = arith.constant 92 : index
    %471 = memref.load %arg2[%c92] : memref<100xf32, #tpu.memory_space<smem>>
    %472 = vector.broadcast %471 : f32 to vector<8x512xf32>
    %473 = arith.select %470, %472, %468 : vector<8x512xi1>, vector<8x512xf32>
    %c93_i32 = arith.constant 93 : i32
    %474 = vector.broadcast %c93_i32 : i32 to vector<8x512xi32>
    %475 = arith.cmpi eq, %11, %474 : vector<8x512xi32>
    %c93 = arith.constant 93 : index
    %476 = memref.load %arg2[%c93] : memref<100xf32, #tpu.memory_space<smem>>
    %477 = vector.broadcast %476 : f32 to vector<8x512xf32>
    %478 = arith.select %475, %477, %473 : vector<8x512xi1>, vector<8x512xf32>
    %c94_i32 = arith.constant 94 : i32
    %479 = vector.broadcast %c94_i32 : i32 to vector<8x512xi32>
    %480 = arith.cmpi eq, %11, %479 : vector<8x512xi32>
    %c94 = arith.constant 94 : index
    %481 = memref.load %arg2[%c94] : memref<100xf32, #tpu.memory_space<smem>>
    %482 = vector.broadcast %481 : f32 to vector<8x512xf32>
    %483 = arith.select %480, %482, %478 : vector<8x512xi1>, vector<8x512xf32>
    %c95_i32 = arith.constant 95 : i32
    %484 = vector.broadcast %c95_i32 : i32 to vector<8x512xi32>
    %485 = arith.cmpi eq, %11, %484 : vector<8x512xi32>
    %c95 = arith.constant 95 : index
    %486 = memref.load %arg2[%c95] : memref<100xf32, #tpu.memory_space<smem>>
    %487 = vector.broadcast %486 : f32 to vector<8x512xf32>
    %488 = arith.select %485, %487, %483 : vector<8x512xi1>, vector<8x512xf32>
    %c96_i32 = arith.constant 96 : i32
    %489 = vector.broadcast %c96_i32 : i32 to vector<8x512xi32>
    %490 = arith.cmpi eq, %11, %489 : vector<8x512xi32>
    %c96 = arith.constant 96 : index
    %491 = memref.load %arg2[%c96] : memref<100xf32, #tpu.memory_space<smem>>
    %492 = vector.broadcast %491 : f32 to vector<8x512xf32>
    %493 = arith.select %490, %492, %488 : vector<8x512xi1>, vector<8x512xf32>
    %c97_i32 = arith.constant 97 : i32
    %494 = vector.broadcast %c97_i32 : i32 to vector<8x512xi32>
    %495 = arith.cmpi eq, %11, %494 : vector<8x512xi32>
    %c97 = arith.constant 97 : index
    %496 = memref.load %arg2[%c97] : memref<100xf32, #tpu.memory_space<smem>>
    %497 = vector.broadcast %496 : f32 to vector<8x512xf32>
    %498 = arith.select %495, %497, %493 : vector<8x512xi1>, vector<8x512xf32>
    %c98_i32 = arith.constant 98 : i32
    %499 = vector.broadcast %c98_i32 : i32 to vector<8x512xi32>
    %500 = arith.cmpi eq, %11, %499 : vector<8x512xi32>
    %c98 = arith.constant 98 : index
    %501 = memref.load %arg2[%c98] : memref<100xf32, #tpu.memory_space<smem>>
    %502 = vector.broadcast %501 : f32 to vector<8x512xf32>
    %503 = arith.select %500, %502, %498 : vector<8x512xi1>, vector<8x512xf32>
    %c99_i32_4 = arith.constant 99 : i32
    %504 = vector.broadcast %c99_i32_4 : i32 to vector<8x512xi32>
    %505 = arith.cmpi eq, %11, %504 : vector<8x512xi32>
    %c99 = arith.constant 99 : index
    %506 = memref.load %arg2[%c99] : memref<100xf32, #tpu.memory_space<smem>>
    %507 = vector.broadcast %506 : f32 to vector<8x512xf32>
    %508 = arith.select %505, %507, %503 : vector<8x512xi1>, vector<8x512xf32>
    %cst_5 = arith.constant 0.000000e+00 : f32
    %509 = vector.broadcast %cst_5 : f32 to vector<8x512xf32>
    %510 = arith.subf %509, %4 : vector<8x512xf32>
    %511 = math.exp %510 : vector<8x512xf32>
    %cst_6 = arith.constant 1.000000e+00 : f32
    %512 = vector.broadcast %cst_6 : f32 to vector<8x512xf32>
    %513 = arith.addf %512, %511 : vector<8x512xf32>
    %514 = tpu.reciprocal %513 {approx = true} : vector<8x512xf32> -> vector<8x512xf32>
    %515 = arith.mulf %513, %514 : vector<8x512xf32>
    %cst_7 = arith.constant 2.000000e+00 : f32
    %516 = vector.broadcast %cst_7 : f32 to vector<8x512xf32>
    %517 = arith.subf %516, %515 : vector<8x512xf32>
    %518 = arith.mulf %514, %517 : vector<8x512xf32>
    %519 = arith.mulf %4, %518 : vector<8x512xf32>
    %520 = arith.addf %519, %508 : vector<8x512xf32>
    %521 = vector.broadcast %0 : f32 to vector<8x512xf32>
    %522 = arith.mulf %521, %520 : vector<8x512xf32>
    %523 = arith.index_cast %2 : i32 to index
    %c0_8 = arith.constant 0 : index
    %524 = vector.load %arg4[%523, %c0_8] : memref<8x512xf32, #tpu.memory_space<vmem>>, vector<8x512xf32>
    tpu.vector_store %arg4[%523, %c0_8], %522 {strides = array<i32>} : memref<8x512xf32, #tpu.memory_space<vmem>>, vector<8x512xf32>,
    %c1_i32_9 = arith.constant 1 : i32
    return
  }
  func.func @transform_0(%arg0: i32) -> (i32, i32) {
    %c0_i32 = arith.constant 0 : i32
    %c0_i32_0 = arith.constant 0 : i32
    return %arg0, %c0_i32 : i32, i32
  }
  func.func @transform_1(%arg0: i32) -> i32 {
    %c0_i32 = arith.constant 0 : i32
    %c0_i32_0 = arith.constant 0 : i32
    return %c0_i32 : i32
  }
  func.func @transform_2(%arg0: i32) -> i32 {
    %c0_i32 = arith.constant 0 : i32
    %c0_i32_0 = arith.constant 0 : i32
    return %c0_i32 : i32
  }
  func.func @transform_3(%arg0: i32) -> (i32, i32) {
    %c0_i32 = arith.constant 0 : i32
    %c0_i32_0 = arith.constant 0 : i32
    return %arg0, %c0_i32 : i32, i32
  }
}

</mosaic_0001>

<bundles_post_ra>
// kernel: tpu_custom_call.1
= control target key start
LH: loop header
LB: loop body
LE: loop exit
PB: predicated region body
PF: predicated region fallthrough
CT: control target
= control target key end

     0   :  { %9 = vsyncpa [#allocation4], 0  ;;  %s335_s0 = inlined_call_operand.hbm [shape: f32[8,512], index: 0, kind: input, shape index: {}]   ;;  %s336_s1 = inlined_call_operand.hbm [shape: f32[8,128], index: 1, kind: input, shape index: {}]   ;;  %s337_s2 = inlined_call_operand.<no memory space> [shape: f32[1], index: 2, kind: input, shape index: {}]   ;;  %s338_s3 = inlined_call_operand.hbm [shape: f32[8,512], index: 3, kind: output, shape index: {}]  }
   0x1   :  { %10 = vsyncpa [#allocation7], 0 }
   0x2   :  { %11 = vsyncpa [#allocation5], 0  ;;  %s17_s14 = sshll.u32 %s335_s0, 4  ;;  %s280_s15 = smov [#allocation3]   ;;  %s18_s14 = int_to_ptr.hbm [resolvable:$true] %s17_s14 }
   0x3   :  { %s19_s16 = sshll.u32 %s280_s15, 4  ;;  %s28_s19 = sshll.u32 %s336_s1, 4  ;;  %s20_s16 = int_to_ptr.vmem [resolvable:$true] %s19_s16  ;;  %s29_s19 = int_to_ptr.hbm [resolvable:$true] %s28_s19 }
   0x4   :  { %22 = dma.hbm_to_vmem [thread:$0]  %s18_s14, 512, %s20_s16, [#allocation4]  }
   0x5   :  { %s281_s20 = smov [#allocation6]  }
   0x6   :  { %s30_s21 = sshll.u32 %s281_s20, 4  ;;  %s31_s21 = int_to_ptr.vmem [resolvable:$true] %s30_s21 }
   0x7   :  { %33 = dma.hbm_to_vmem [thread:$0]  %s29_s19, 128, %s31_s21, [#allocation7]  }
   0x8   :  { %274 = dma.done.wait [#allocation4], 512  }
   0x9   :  { %275 = vsyncadd [#allocation4], 4294966784 }
   0xa   :  { %276 = dma.done.wait [#allocation7], 128  }
   0xb   :  { %277 = vsyncadd [#allocation7], 4294967168  ;;  %v309_v0 = vld [vmem:[#allocation3 + $0x10] sm:$0xff]  ;;  %v311_v1 = vld [vmem:[#allocation3] sm:$0xff]  ;;  %v129_v61 = vstv %s337_s2  ;;  %s282_s2 = smov [#allocation8]   ;;  %s147_s25 = sshll.u32 %s338_s3, 4  ;;  %s148_s25 = int_to_ptr.hbm [resolvable:$true] %s147_s25 }
   0xc   :  { %v55_v2 = vmul.f32 99.0, %v309_v0  ;;  %v53_v3 = vmul.f32 99.0, %v311_v1  ;;  %v315_v4 = vld [vmem:[#allocation3 + $0x18] sm:$0xff]  ;;  %v317_v5 = vld [vmem:[#allocation3 + $0x8] sm:$0xff]  ;;  %v45_v28 = vld [vmem:[#allocation6] sm:$0xff]  ;;  %v91_v33 = vsub.f32 0.0, %v309_v0 }
   0xd   :  { %v56_v6 = vmul.f32 99.0, %v315_v4  ;;  %v54_v7 = vmul.f32 99.0, %v317_v5  ;;  %v89_v34 = vsub.f32 0.0, %v311_v1  ;;  %v92_v39 = vsub.f32 0.0, %v315_v4  ;;  %s145_s22 = sshll.u32 %s282_s2, 4  ;;  %s146_s22 = int_to_ptr.vmem [resolvable:$true] %s145_s22 }
   0xe   :  { %vm168_vm0 = vcmp.lt.s32.totalorder %v55_v2, 0  ;;  %v169_v8 = vceil.f32 %v55_v2  ;;  %v170_v9 = vfloor.f32 %v55_v2  ;;  %vm158_vm1 = vcmp.lt.s32.totalorder %v53_v3, 0 }
   0xf   :  { %v159_v10 = vceil.f32 %v53_v3  ;;  %v160_v11 = vfloor.f32 %v53_v3  ;;  %vm173_vm2 = vcmp.lt.s32.totalorder %v56_v6, 0  ;;  %v174_v13 = vceil.f32 %v56_v6 }
  0x10   :  { %v171_v12 = vsel %vm168_vm0, %v169_v8, %v170_v9  ;;  %v175_v14 = vfloor.f32 %v56_v6  ;;  %v164_v17 = vceil.f32 %v54_v7  ;;  %v165_v18 = vfloor.f32 %v54_v7 }
  0x11   :  { %v172_v15 = vcvt.f32.s32 %v171_v12  ;;  %v161_v16 = vsel %vm158_vm1, %v159_v10, %v160_v11  ;;  %vm163_vm3 = vcmp.lt.s32.totalorder %v54_v7, 0  ;;  %v97_v35 = vmul.f32 1.442695, %v91_v33 }
  0x12   :  { %v162_v19 = vcvt.f32.s32 %v161_v16  ;;  %v176_v21 = vsel %vm173_vm2, %v174_v13, %v175_v14  ;;  %v166_v23 = vsel %vm163_vm3, %v164_v17, %v165_v18  ;;  %v93_v36 = vmul.f32 1.442695, %v89_v34 }
  0x13   :  { %vm65_vm4 = vcmp.gt.s32.totalorder %v172_v15, 0  ;;  %v177_v26 = vcvt.f32.s32 %v176_v21  ;;  %v167_v27 = vcvt.f32.s32 %v166_v23  ;;  %186 = vpow2.f32 %v97_v35 }
  0x14   :  { %v66_v20 = vsel %vm65_vm4, %v172_v15, 0  ;;  %vm61_vm5 = vcmp.gt.s32.totalorder %v162_v19, 0  ;;  %188 = vpow2.f32 %v93_v36  ;;  %v90_v41 = vsub.f32 0.0, %v317_v5 }
  0x15   :  { %vm73_vm6 = vcmp.lt.s32.totalorder %v66_v20, 99  ;;  %v62_v22 = vsel %vm61_vm5, %v162_v19, 0  ;;  %vm67_vm8 = vcmp.gt.s32.totalorder %v177_v26, 0  ;;  %vm63_vm9 = vcmp.gt.s32.totalorder %v167_v27, 0 }
  0x16   :  { %v74_v24 = vsel %vm73_vm6, %v66_v20, 99  ;;  %vm69_vm7 = vcmp.lt.s32.totalorder %v62_v22, 99  ;;  %v68_v29 = vsel %vm67_vm8, %v177_v26, 0  ;;  %v64_v30 = vsel %vm63_vm9, %v167_v27, 0 }
  0x17   :  { %183 = vset.pattern.permute.xlu1 %v74_v24  ;;  %v70_v25 = vsel %vm69_vm7, %v62_v22, 99  ;;  %vm75_vm10 = vcmp.lt.s32.totalorder %v68_v29, 99  ;;  %vm71_vm11 = vcmp.lt.s32.totalorder %v64_v30, 99  ;;  %v99_v43 = vmul.f32 1.442695, %v92_v39 }
  0x18   :  { %181 = vset.pattern.permute.xlu0 %v70_v25  ;;  %v76_v31 = vsel %vm75_vm10, %v68_v29, 99  ;;  %v72_v32 = vsel %vm71_vm11, %v64_v30, 99  ;;  %v95_v44 = vmul.f32 1.442695, %v90_v41 }
  0x19   :  { %v187_v37 = vpop.eup %186 }
  0x1a   :  { %v189_v38 = vpop.eup %188  ;;  %v103_v40 = vadd.f32 1.0, %v187_v37 }
  0x1b   :  { %v101_v42 = vadd.f32 1.0, %v189_v38 }
  0x1c   :  { %190 = vrcp.f32 %v103_v40 }
  0x1d   :  { %192 = vrcp.f32 %v101_v42 }
  0x1e   :  { %194 = vpow2.f32 %v99_v43 }
  0x1f   :  { %84 = vperm.xlu1 %183, %v45_v28   ;;  %196 = vpow2.f32 %v95_v44 }
  0x20   :  { %78 = vperm.xlu0 %181, %v45_v28  }
  0x22   :  { %v191_v45 = vpop.eup %190 }
  0x23   :  { %v193_v46 = vpop.eup %192  ;;  %v111_v48 = vmul.f32 %v191_v45, %v103_v40 }
  0x24   :  { %v195_v47 = vpop.eup %194  ;;  %v109_v50 = vmul.f32 %v193_v46, %v101_v42 }
  0x25   :  { %v197_v49 = vpop.eup %196  ;;  %v104_v51 = vadd.f32 1.0, %v195_v47  ;;  %v115_v52 = vsub.f32 2.0, %v111_v48 }
  0x26   :  { %v102_v53 = vadd.f32 1.0, %v197_v49  ;;  %v113_v54 = vsub.f32 2.0, %v109_v50 }
  0x27   :  { %184 = vset.pattern.permute.xlu1 %v76_v31  ;;  %198 = vrcp.f32 %v104_v51  ;;  %v119_v55 = vmul.f32 %v191_v45, %v115_v52 }
  0x28   :  { %182 = vset.pattern.permute.xlu0 %v72_v32  ;;  %200 = vrcp.f32 %v102_v53  ;;  %v117_v56 = vmul.f32 %v193_v46, %v113_v54 }
  0x29   :  { %v123_v57 = vmul.f32 %v119_v55, %v309_v0 }
  0x2a   :  { %v121_v59 = vmul.f32 %v117_v56, %v311_v1 }
  0x2d   :  { %v199_v58 = vpop.eup %198 }
  0x2e   :  { %v201_v60 = vpop.eup %200  ;;  %v112_v3 = vmul.f32 %v199_v58, %v104_v51 }
  0x2f   :  { %87 = vperm.xlu1 %184, %v45_v28   ;;  %v110_v7 = vmul.f32 %v201_v60, %v102_v53 }
  0x30   :  { %81 = vperm.xlu0 %182, %v45_v28   ;;  %v116_v10 = vsub.f32 2.0, %v112_v3 }
  0x31   :  { %v114_v0 = vsub.f32 2.0, %v110_v7 }
  0x32   :  { %v120_v11 = vmul.f32 %v199_v58, %v116_v10 }
  0x33   :  { %v118_v12 = vmul.f32 %v201_v60, %v114_v0 }
  0x34   :  { %v124_v1 = vmul.f32 %v120_v11, %v315_v4 }
  0x35   :  { %v122_v13 = vmul.f32 %v118_v12, %v317_v5 }
  0x38   :  { %185 = vset.pattern.permute.xlu0 %v76_v31 }
  0x91   :  { %v85_v62 = vpop.permute.xlu1 %84 }
  0x92   :  { %v127_v63 = vadd.f32 %v123_v57, %v85_v62  ;;  %v79_v2 = vpop.permute.xlu0 %78 }
  0x93   :  { %v125_v6 = vadd.f32 %v121_v59, %v79_v2 }
  0x94   :  { %v132_v8 = vmul.f32 %v129_v61, %v127_v63 }
  0x95   :  { %v130_v9 = vmul.f32 %v129_v61, %v125_v6 }
  0x96   :  { %138 = vst [vmem:[#allocation8 + $0x10] sm:$0xff] %v132_v8 }
  0x97   :  { %136 = vst [vmem:[#allocation8] sm:$0xff] %v130_v9 }
  0xa1   :  { %v88_v14 = vpop.permute.xlu1 %87 }
  0xa2   :  { %v128_v15 = vadd.f32 %v124_v1, %v88_v14  ;;  %v82_v16 = vpop.permute.xlu0 %81 }
  0xa3   :  { %v126_v17 = vadd.f32 %v122_v13, %v82_v16 }
  0xa4   :  { %v133_v18 = vmul.f32 %v129_v61, %v128_v15 }
  0xa5   :  { %v131_v19 = vmul.f32 %v129_v61, %v126_v17 }
  0xa6   :  { %139 = vst [vmem:[#allocation8 + $0x18] sm:$0xff] %v133_v18 }
  0xa7   :  { %137 = vst [vmem:[#allocation8 + $0x8] sm:$0xff] %v131_v19 }
  0xa8   :  { %150 = dma.vmem_to_hbm [thread:$0]  %s146_s22, 512, %s148_s25, [#allocation5]  }
  0xa9   :  { %278 = dma.done.wait [#allocation5], 512  }
  0xaa   :  { %279 = vsyncadd [#allocation5], 4294966784 }
  0xab   :  { %155 = vsyncpa [#allocation4], 1 }
  0xac   :  { %156 = vsyncpa [#allocation7], 1 }
  0xad   :  { %157 = vsyncpa [#allocation5], 1 }

// kernel: tpu_custom_call.1
= control target key start
LH: loop header
LB: loop body
LE: loop exit
PB: predicated region body
PF: predicated region fallthrough
CT: control target
= control target key end

     0   :  { %9 = vsyncpa [#allocation4], 0  ;;  %s2036_s0 = inlined_call_operand.hbm [shape: f32[8,512], index: 0, kind: input, shape index: {}]   ;;  %s2037_s1 = inlined_call_operand.vmem [shape: f32[100], index: 1, kind: input, shape index: {}]   ;;  %s2038_s2 = inlined_call_operand.<no memory space> [shape: f32[1], index: 2, kind: input, shape index: {}]   ;;  %s2039_s3 = inlined_call_operand.hbm [shape: f32[8,512], index: 3, kind: output, shape index: {}]  }
   0x1   :  { %10 = vsyncpa [#allocation6], 0 }
   0x2   :  { %11 = vsyncpa [#allocation5], 0  ;;  %s17_s14 = sshll.u32 %s2036_s0, 4  ;;  %s1344_s15 = smov [#allocation3]   ;;  %s18_s14 = int_to_ptr.hbm [resolvable:$true] %s17_s14 }
   0x3   :  { %s19_s16 = sshll.u32 %s1344_s15, 4  ;;  %s28_s19 = sshll.u32 %s2037_s1, 4  ;;  %s20_s16 = int_to_ptr.vmem [resolvable:$true] %s19_s16  ;;  %s29_s19 = int_to_ptr.vmem [resolvable:$true] %s28_s19 }
   0x4   :  { %22 = dma.hbm_to_vmem [thread:$0]  %s18_s14, 512, %s20_s16, [#allocation4]  }
   0x5   :  { %s1345_s20 = smov [#allocation7]  }
   0x6   :  { %31 = dma.vmem_to_smem %s29_s19, 16, %s1345_s20, [#allocation6]  }
   0x7   :  { %1338 = dma.done.wait [#allocation4], 512  }
   0x8   :  { %1339 = vsyncadd [#allocation4], 4294966784 }
   0x9   :  { %1340 = dma.done.wait [#allocation6], 16  }
   0xa   :  { %1341 = vsyncadd [#allocation6], 4294967280 }
   0xb   :  { %42 = sfence }
   0xc   :  { %v47_v0 = vld [vmem:[#allocation3] sm:$0xff]  ;;  %v48_v1 = vld [vmem:[#allocation3 + $0x8] sm:$0xff]  ;;  %v49_v2 = vld [vmem:[#allocation3 + $0x10] sm:$0xff]  ;;  %s75_s0 = sld [smem:[#allocation7]] }
   0xd   :  { %v50_v3 = vld [vmem:[#allocation3 + $0x18] sm:$0xff]  ;;  %v51_v4 = vmul.f32 99.0, %v47_v0  ;;  %v52_v5 = vmul.f32 99.0, %v48_v1  ;;  %v53_v6 = vmul.f32 99.0, %v49_v2  ;;  %s1136_s21 = sld [smem:[#allocation7 + $0x1]] }
   0xe   :  { %v54_v7 = vmul.f32 99.0, %v50_v3  ;;  %s1137_s1 = sld [smem:[#allocation7 + $0x2]] }
   0xf   :  { %vm1235_vm0 = vcmp.lt.s32.totalorder %v51_v4, 0  ;;  %v1236_v8 = vceil.f32 %v51_v4  ;;  %v1237_v9 = vfloor.f32 %v51_v4  ;;  %vm1240_vm1 = vcmp.lt.s32.totalorder %v52_v5, 0  ;;  %s1138_s22 = sld [smem:[#allocation7 + $0x3]] }
  0x10   :  { %v1241_v10 = vceil.f32 %v52_v5  ;;  %v1242_v11 = vfloor.f32 %v52_v5  ;;  %vm1245_vm2 = vcmp.lt.s32.totalorder %v53_v6, 0  ;;  %v1246_v12 = vceil.f32 %v53_v6  ;;  %s1139_s23 = sld [smem:[#allocation7 + $0x4]] }
  0x11   :  { %v1238_v13 = vsel %vm1235_vm0, %v1236_v8, %v1237_v9  ;;  %v1247_v14 = vfloor.f32 %v53_v6  ;;  %vm1250_vm3 = vcmp.lt.s32.totalorder %v54_v7, 0  ;;  %v1251_v15 = vceil.f32 %v54_v7  ;;  %s1385_s24 = sld [smem:[#allocation7 + $0x5]] }
  0x12   :  { %v1239_v16 = vcvt.f32.s32 %v1238_v13  ;;  %v1243_v17 = vsel %vm1240_vm1, %v1241_v10, %v1242_v11  ;;  %v1252_v18 = vfloor.f32 %v54_v7  ;;  %v76_v21 = vstv %s75_s0  ;;  %s1391_s25 = sld [smem:[#allocation7 + $0x6]] }
  0x13   :  { %v1244_v19 = vcvt.f32.s32 %v1243_v17  ;;  %v1248_v20 = vsel %vm1245_vm2, %v1246_v12, %v1247_v14  ;;  %v82_v22 = vstv %s1136_s21  ;;  %s1399_s26 = sld [smem:[#allocation7 + $0x7]] }
  0x14   :  { %v1249_v23 = vcvt.f32.s32 %v1248_v20  ;;  %v1253_v24 = vsel %vm1250_vm3, %v1251_v15, %v1252_v18  ;;  %vm59_vm4 = vcmp.gt.s32.totalorder %v1239_v16, 0  ;;  %v92_v25 = vstv %s1137_s1  ;;  %s1405_s27 = sld [smem:[#allocation7 + $0x8]] }
  0x15   :  { %v1254_v26 = vcvt.f32.s32 %v1253_v24  ;;  %v60_v27 = vsel %vm59_vm4, %v1239_v16, 0  ;;  %vm61_vm5 = vcmp.gt.s32.totalorder %v1244_v19, 0  ;;  %v102_v28 = vstv %s1138_s22  ;;  %s1411_s28 = sld [smem:[#allocation7 + $0x9]] }
  0x16   :  { %v62_v29 = vsel %vm61_vm5, %v1244_v19, 0  ;;  %vm63_vm6 = vcmp.gt.s32.totalorder %v1249_v23, 0  ;;  %vm67_vm7 = vcmp.lt.s32.totalorder %v60_v27, 99  ;;  %v112_v30 = vstv %s1139_s23  ;;  %s1417_s29 = sld [smem:[#allocation7 + $0xa]] }
  0x17   :  { %v64_v31 = vsel %vm63_vm6, %v1249_v23, 0  ;;  %vm65_vm8 = vcmp.gt.s32.totalorder %v1254_v26, 0  ;;  %v1373_v32 = vsel %vm67_vm7, %v60_v27, 99  ;;  %vm69_vm9 = vcmp.lt.s32.totalorder %v62_v29, 99  ;;  %s1427_s30 = sld [smem:[#allocation7 + $0xb]] }
  0x18   :  { %v66_v33 = vsel %vm65_vm8, %v1254_v26, 0  ;;  %v1375_v34 = vsel %vm69_vm9, %v62_v29, 99  ;;  %vm71_vm10 = vcmp.lt.s32.totalorder %v64_v31, 99  ;;  %vm77_vm11 = vcmp.eq.s32.totalorder %v1373_v32, 1  ;;  %s1433_s4 = sld [smem:[#allocation7 + $0xc]] }
  0x19   :  { %v1378_v35 = vsel %vm71_vm10, %v64_v31, 99  ;;  %vm73_vm12 = vcmp.lt.s32.totalorder %v66_v33, 99  ;;  %vm78_vm13 = vcmp.eq.s32.totalorder %v1375_v34, 1  ;;  %v83_v36 = vsel %vm77_vm11, %v82_v22, %v76_v21  ;;  %s1439_s5 = sld [smem:[#allocation7 + $0xd]] }
  0x1a   :  { %v1381_v37 = vsel %vm73_vm12, %v66_v33, 99  ;;  %vm79_vm14 = vcmp.eq.s32.totalorder %v1378_v35, 1  ;;  %v84_v38 = vsel %vm78_vm13, %v82_v22, %v76_v21  ;;  %vm87_vm15 = vcmp.eq.s32.totalorder %v1373_v32, 2  ;;  %s1445_s6 = sld [smem:[#allocation7 + $0xe]] }
  0x1b   :  { %vm80_vm0 = vcmp.eq.s32.totalorder %v1381_v37, 1  ;;  %v85_v39 = vsel %vm79_vm14, %v82_v22, %v76_v21  ;;  %vm88_vm1 = vcmp.eq.s32.totalorder %v1375_v34, 2  ;;  %vm89_vm2 = vcmp.eq.s32.totalorder %v1378_v35, 2  ;;  %s1455_s7 = sld [smem:[#allocation7 + $0xf]] }
  0x1c   :  { %v86_v40 = vsel %vm80_vm0, %v82_v22, %v76_v21  ;;  %vm90_vm3 = vcmp.eq.s32.totalorder %v1381_v37, 2  ;;  %v93_v41 = vsel %vm87_vm15, %v92_v25, %v83_v36  ;;  %v94_v42 = vsel %vm88_vm1, %v92_v25, %v84_v38  ;;  %s1461_s8 = sld [smem:[#allocation7 + $0x10]] }
  0x1d   :  { %v95_v43 = vsel %vm89_vm2, %v92_v25, %v85_v39  ;;  %v96_v44 = vsel %vm90_vm3, %v92_v25, %v86_v40  ;;  %vm97_vm4 = vcmp.eq.s32.totalorder %v1373_v32, 3  ;;  %vm98_vm5 = vcmp.eq.s32.totalorder %v1375_v34, 3  ;;  %s1467_s9 = sld [smem:[#allocation7 + $0x11]] }
  0x1e   :  { %vm99_vm6 = vcmp.eq.s32.totalorder %v1378_v35, 3  ;;  %vm100_vm7 = vcmp.eq.s32.totalorder %v1381_v37, 3  ;;  %v103_v45 = vsel %vm97_vm4, %v102_v28, %v93_v41  ;;  %v104_v46 = vsel %vm98_vm5, %v102_v28, %v94_v42  ;;  %s1473_s10 = sld [smem:[#allocation7 + $0x12]] }
  0x1f   :  { %v105_v47 = vsel %vm99_vm6, %v102_v28, %v95_v43  ;;  %v106_v48 = vsel %vm100_vm7, %v102_v28, %v96_v44  ;;  %vm107_vm8 = vcmp.eq.s32.totalorder %v1373_v32, 4  ;;  %vm108_vm9 = vcmp.eq.s32.totalorder %v1375_v34, 4  ;;  %s1483_s11 = sld [smem:[#allocation7 + $0x13]] }
  0x20   :  { %vm109_vm10 = vcmp.eq.s32.totalorder %v1378_v35, 4  ;;  %vm110_vm11 = vcmp.eq.s32.totalorder %v1381_v37, 4  ;;  %v113_v49 = vsel %vm107_vm8, %v112_v30, %v103_v45  ;;  %v114_v50 = vsel %vm108_vm9, %v112_v30, %v104_v46  ;;  %s1489_s12 = sld [smem:[#allocation7 + $0x14]] }
  0x21   :  { %v115_v51 = vsel %vm109_vm10, %v112_v30, %v105_v47  ;;  %v116_v52 = vsel %vm110_vm11, %v112_v30, %v106_v48  ;;  %vm117_vm12 = vcmp.eq.s32.totalorder %v1373_v32, 5  ;;  %vm118_vm13 = vcmp.eq.s32.totalorder %v1375_v34, 5  ;;  %s1495_s13 = sld [smem:[#allocation7 + $0x15]] }
  0x22   :  { %vm119_vm14 = vcmp.eq.s32.totalorder %v1378_v35, 5  ;;  %vm120_vm15 = vcmp.eq.s32.totalorder %v1381_v37, 5  ;;  %v122_v53 = vstv %s1385_s24  ;;  %vm127_vm0 = vcmp.eq.s32.totalorder %v1373_v32, 6  ;;  %s1501_s14 = sld [smem:[#allocation7 + $0x16]] }
  0x23   :  { %v123_v54 = vsel %vm117_vm12, %v122_v53, %v113_v49  ;;  %v124_v55 = vsel %vm118_vm13, %v122_v53, %v114_v50  ;;  %v125_v56 = vsel %vm119_vm14, %v122_v53, %v115_v51  ;;  %v126_v57 = vsel %vm120_vm15, %v122_v53, %v116_v52  ;;  %s1511_s15 = sld [smem:[#allocation7 + $0x17]] }
  0x24   :  { %vm128_vm1 = vcmp.eq.s32.totalorder %v1375_v34, 6  ;;  %vm129_vm2 = vcmp.eq.s32.totalorder %v1378_v35, 6  ;;  %vm130_vm3 = vcmp.eq.s32.totalorder %v1381_v37, 6  ;;  %v132_v58 = vstv %s1391_s25  ;;  %s1517_s16 = sld [smem:[#allocation7 + $0x18]] }
  0x25   :  { %v133_v59 = vsel %vm127_vm0, %v132_v58, %v123_v54  ;;  %v134_v60 = vsel %vm128_vm1, %v132_v58, %v124_v55  ;;  %v135_v61 = vsel %vm129_vm2, %v132_v58, %v125_v56  ;;  %v136_v62 = vsel %vm130_vm3, %v132_v58, %v126_v57  ;;  %s1523_s17 = sld [smem:[#allocation7 + $0x19]] }
  0x26   :  { %vm137_vm4 = vcmp.eq.s32.totalorder %v1373_v32, 7  ;;  %vm138_vm5 = vcmp.eq.s32.totalorder %v1375_v34, 7  ;;  %vm139_vm6 = vcmp.eq.s32.totalorder %v1378_v35, 7  ;;  %vm140_vm7 = vcmp.eq.s32.totalorder %v1381_v37, 7  ;;  %s1529_s18 = sld [smem:[#allocation7 + $0x1a]] }
  0x27   :  { %v142_v63 = vstv %s1399_s26  ;;  %vm147_vm8 = vcmp.eq.s32.totalorder %v1373_v32, 8  ;;  %vm148_vm9 = vcmp.eq.s32.totalorder %v1375_v34, 8  ;;  %vm149_vm10 = vcmp.eq.s32.totalorder %v1378_v35, 8  ;;  %s1539_s19 = sld [smem:[#allocation7 + $0x1b]] }
  0x28   :  { %v143_v0 = vsel %vm137_vm4, %v142_v63, %v133_v59  ;;  %v144_v1 = vsel %vm138_vm5, %v142_v63, %v134_v60  ;;  %v145_v2 = vsel %vm139_vm6, %v142_v63, %v135_v61  ;;  %v146_v3 = vsel %vm140_vm7, %v142_v63, %v136_v62  ;;  %s1545_s20 = sld [smem:[#allocation7 + $0x1c]] }
  0x29   :  { %vm150_vm11 = vcmp.eq.s32.totalorder %v1381_v37, 8  ;;  %v152_v4 = vstv %s1405_s27  ;;  %vm157_vm12 = vcmp.eq.s32.totalorder %v1373_v32, 9  ;;  %vm158_vm13 = vcmp.eq.s32.totalorder %v1375_v34, 9  ;;  %s1551_s0 = sld [smem:[#allocation7 + $0x1d]] }
  0x2a   :  { %v153_v5 = vsel %vm147_vm8, %v152_v4, %v143_v0  ;;  %v154_v6 = vsel %vm148_vm9, %v152_v4, %v144_v1  ;;  %v155_v7 = vsel %vm149_vm10, %v152_v4, %v145_v2  ;;  %v156_v8 = vsel %vm150_vm11, %v152_v4, %v146_v3  ;;  %s1557_s21 = sld [smem:[#allocation7 + $0x1e]] }
  0x2b   :  { %vm159_vm14 = vcmp.eq.s32.totalorder %v1378_v35, 9  ;;  %vm160_vm15 = vcmp.eq.s32.totalorder %v1381_v37, 9  ;;  %v162_v9 = vstv %s1411_s28  ;;  %vm167_vm0 = vcmp.eq.s32.totalorder %v1373_v32, 10  ;;  %s1567_s1 = sld [smem:[#allocation7 + $0x1f]] }
  0x2c   :  { %v163_v10 = vsel %vm157_vm12, %v162_v9, %v153_v5  ;;  %v164_v11 = vsel %vm158_vm13, %v162_v9, %v154_v6  ;;  %v165_v12 = vsel %vm159_vm14, %v162_v9, %v155_v7  ;;  %v166_v13 = vsel %vm160_vm15, %v162_v9, %v156_v8  ;;  %s1573_s22 = sld [smem:[#allocation7 + $0x20]] }
  0x2d   :  { %vm168_vm1 = vcmp.eq.s32.totalorder %v1375_v34, 10  ;;  %vm169_vm2 = vcmp.eq.s32.totalorder %v1378_v35, 10  ;;  %vm170_vm3 = vcmp.eq.s32.totalorder %v1381_v37, 10  ;;  %v172_v14 = vstv %s1417_s29  ;;  %s1579_s23 = sld [smem:[#allocation7 + $0x21]] }
  0x2e   :  { %v173_v15 = vsel %vm167_vm0, %v172_v14, %v163_v10  ;;  %v174_v16 = vsel %vm168_vm1, %v172_v14, %v164_v11  ;;  %v175_v17 = vsel %vm169_vm2, %v172_v14, %v165_v12  ;;  %v176_v18 = vsel %vm170_vm3, %v172_v14, %v166_v13  ;;  %s1585_s24 = sld [smem:[#allocation7 + $0x22]] }
  0x2f   :  { %vm177_vm4 = vcmp.eq.s32.totalorder %v1373_v32, 11  ;;  %vm178_vm5 = vcmp.eq.s32.totalorder %v1375_v34, 11  ;;  %vm179_vm6 = vcmp.eq.s32.totalorder %v1378_v35, 11  ;;  %vm180_vm7 = vcmp.eq.s32.totalorder %v1381_v37, 11  ;;  %s1595_s25 = sld [smem:[#allocation7 + $0x23]] }
  0x30   :  { %v182_v19 = vstv %s1427_s30  ;;  %vm187_vm8 = vcmp.eq.s32.totalorder %v1373_v32, 12  ;;  %vm188_vm9 = vcmp.eq.s32.totalorder %v1375_v34, 12  ;;  %vm189_vm10 = vcmp.eq.s32.totalorder %v1378_v35, 12  ;;  %s1601_s26 = sld [smem:[#allocation7 + $0x24]] }
  0x31   :  { %v183_v20 = vsel %vm177_vm4, %v182_v19, %v173_v15  ;;  %v184_v21 = vsel %vm178_vm5, %v182_v19, %v174_v16  ;;  %v185_v22 = vsel %vm179_vm6, %v182_v19, %v175_v17  ;;  %v186_v23 = vsel %vm180_vm7, %v182_v19, %v176_v18  ;;  %s1607_s27 = sld [smem:[#allocation7 + $0x25]] }
  0x32   :  { %vm190_vm11 = vcmp.eq.s32.totalorder %v1381_v37, 12  ;;  %v192_v24 = vstv %s1433_s4  ;;  %vm197_vm12 = vcmp.eq.s32.totalorder %v1373_v32, 13  ;;  %vm198_vm13 = vcmp.eq.s32.totalorder %v1375_v34, 13  ;;  %s1613_s28 = sld [smem:[#allocation7 + $0x26]] }
  0x33   :  { %v193_v25 = vsel %vm187_vm8, %v192_v24, %v183_v20  ;;  %v194_v26 = vsel %vm188_vm9, %v192_v24, %v184_v21  ;;  %v195_v27 = vsel %vm189_vm10, %v192_v24, %v185_v22  ;;  %v196_v28 = vsel %vm190_vm11, %v192_v24, %v186_v23  ;;  %s1623_s29 = sld [smem:[#allocation7 + $0x27]] }
  0x34   :  { %vm199_vm14 = vcmp.eq.s32.totalorder %v1378_v35, 13  ;;  %vm200_vm15 = vcmp.eq.s32.totalorder %v1381_v37, 13  ;;  %v202_v29 = vstv %s1439_s5  ;;  %vm207_vm0 = vcmp.eq.s32.totalorder %v1373_v32, 14  ;;  %s1629_s30 = sld [smem:[#allocation7 + $0x28]] }
  0x35   :  { %v203_v30 = vsel %vm197_vm12, %v202_v29, %v193_v25  ;;  %v204_v31 = vsel %vm198_vm13, %v202_v29, %v194_v26  ;;  %v205_v33 = vsel %vm199_vm14, %v202_v29, %v195_v27  ;;  %v206_v36 = vsel %vm200_vm15, %v202_v29, %v196_v28  ;;  %s1635_s4 = sld [smem:[#allocation7 + $0x29]] }
  0x36   :  { %vm208_vm1 = vcmp.eq.s32.totalorder %v1375_v34, 14  ;;  %vm209_vm2 = vcmp.eq.s32.totalorder %v1378_v35, 14  ;;  %vm210_vm3 = vcmp.eq.s32.totalorder %v1381_v37, 14  ;;  %v212_v38 = vstv %s1445_s6  ;;  %s1641_s5 = sld [smem:[#allocation7 + $0x2a]] }
  0x37   :  { %v213_v39 = vsel %vm207_vm0, %v212_v38, %v203_v30  ;;  %v214_v40 = vsel %vm208_vm1, %v212_v38, %v204_v31  ;;  %v215_v41 = vsel %vm209_vm2, %v212_v38, %v205_v33  ;;  %v216_v42 = vsel %vm210_vm3, %v212_v38, %v206_v36  ;;  %s1651_s6 = sld [smem:[#allocation7 + $0x2b]] }
  0x38   :  { %vm217_vm4 = vcmp.eq.s32.totalorder %v1373_v32, 15  ;;  %vm218_vm5 = vcmp.eq.s32.totalorder %v1375_v34, 15  ;;  %vm219_vm6 = vcmp.eq.s32.totalorder %v1378_v35, 15  ;;  %vm220_vm7 = vcmp.eq.s32.totalorder %v1381_v37, 15 }
  0x39   :  { %v222_v43 = vstv %s1455_s7  ;;  %vm227_vm8 = vcmp.eq.s32.totalorder %v1373_v32, 16  ;;  %vm228_vm9 = vcmp.eq.s32.totalorder %v1375_v34, 16  ;;  %vm229_vm10 = vcmp.eq.s32.totalorder %v1378_v35, 16  ;;  %s1657_s7 = sld [smem:[#allocation7 + $0x2c]] }
  0x3a   :  { %v223_v44 = vsel %vm217_vm4, %v222_v43, %v213_v39  ;;  %v224_v45 = vsel %vm218_vm5, %v222_v43, %v214_v40  ;;  %v225_v46 = vsel %vm219_vm6, %v222_v43, %v215_v41  ;;  %v226_v47 = vsel %vm220_vm7, %v222_v43, %v216_v42 }
  0x3b   :  { %vm230_vm11 = vcmp.eq.s32.totalorder %v1381_v37, 16  ;;  %v232_v48 = vstv %s1461_s8  ;;  %vm237_vm12 = vcmp.eq.s32.totalorder %v1373_v32, 17  ;;  %vm238_vm13 = vcmp.eq.s32.totalorder %v1375_v34, 17  ;;  %s1663_s8 = sld [smem:[#allocation7 + $0x2d]] }
  0x3c   :  { %v233_v49 = vsel %vm227_vm8, %v232_v48, %v223_v44  ;;  %v234_v50 = vsel %vm228_vm9, %v232_v48, %v224_v45  ;;  %v235_v51 = vsel %vm229_vm10, %v232_v48, %v225_v46  ;;  %v236_v52 = vsel %vm230_vm11, %v232_v48, %v226_v47 }
  0x3d   :  { %vm239_vm14 = vcmp.eq.s32.totalorder %v1378_v35, 17  ;;  %vm240_vm15 = vcmp.eq.s32.totalorder %v1381_v37, 17  ;;  %v242_v53 = vstv %s1467_s9  ;;  %vm247_vm0 = vcmp.eq.s32.totalorder %v1373_v32, 18  ;;  %s1669_s9 = sld [smem:[#allocation7 + $0x2e]] }
  0x3e   :  { %v243_v54 = vsel %vm237_vm12, %v242_v53, %v233_v49  ;;  %v244_v55 = vsel %vm238_vm13, %v242_v53, %v234_v50  ;;  %v245_v56 = vsel %vm239_vm14, %v242_v53, %v235_v51  ;;  %v246_v57 = vsel %vm240_vm15, %v242_v53, %v236_v52 }
  0x3f   :  { %vm248_vm1 = vcmp.eq.s32.totalorder %v1375_v34, 18  ;;  %vm249_vm2 = vcmp.eq.s32.totalorder %v1378_v35, 18  ;;  %vm250_vm3 = vcmp.eq.s32.totalorder %v1381_v37, 18  ;;  %v252_v58 = vstv %s1473_s10  ;;  %s1679_s10 = sld [smem:[#allocation7 + $0x2f]] }
  0x40   :  { %v253_v59 = vsel %vm247_vm0, %v252_v58, %v243_v54  ;;  %v254_v60 = vsel %vm248_vm1, %v252_v58, %v244_v55  ;;  %v255_v61 = vsel %vm249_vm2, %v252_v58, %v245_v56  ;;  %v256_v62 = vsel %vm250_vm3, %v252_v58, %v246_v57 }
  0x41   :  { %vm257_vm4 = vcmp.eq.s32.totalorder %v1373_v32, 19  ;;  %vm258_vm5 = vcmp.eq.s32.totalorder %v1375_v34, 19  ;;  %vm259_vm6 = vcmp.eq.s32.totalorder %v1378_v35, 19  ;;  %vm260_vm7 = vcmp.eq.s32.totalorder %v1381_v37, 19 }
  0x42   :  { %v262_v63 = vstv %s1483_s11  ;;  %vm267_vm8 = vcmp.eq.s32.totalorder %v1373_v32, 20  ;;  %vm268_vm9 = vcmp.eq.s32.totalorder %v1375_v34, 20  ;;  %vm269_vm10 = vcmp.eq.s32.totalorder %v1378_v35, 20  ;;  %s1685_s11 = sld [smem:[#allocation7 + $0x30]] }
  0x43   :  { %v263_v0 = vsel %vm257_vm4, %v262_v63, %v253_v59  ;;  %v264_v1 = vsel %vm258_vm5, %v262_v63, %v254_v60  ;;  %v265_v2 = vsel %vm259_vm6, %v262_v63, %v255_v61  ;;  %v266_v3 = vsel %vm260_vm7, %v262_v63, %v256_v62 }
  0x44   :  { %vm270_vm11 = vcmp.eq.s32.totalorder %v1381_v37, 20  ;;  %v272_v4 = vstv %s1489_s12  ;;  %vm277_vm12 = vcmp.eq.s32.totalorder %v1373_v32, 21  ;;  %vm278_vm13 = vcmp.eq.s32.totalorder %v1375_v34, 21  ;;  %s1691_s12 = sld [smem:[#allocation7 + $0x31]] }
  0x45   :  { %v273_v5 = vsel %vm267_vm8, %v272_v4, %v263_v0  ;;  %v274_v6 = vsel %vm268_vm9, %v272_v4, %v264_v1  ;;  %v275_v7 = vsel %vm269_vm10, %v272_v4, %v265_v2  ;;  %v276_v8 = vsel %vm270_vm11, %v272_v4, %v266_v3 }
  0x46   :  { %vm279_vm14 = vcmp.eq.s32.totalorder %v1378_v35, 21  ;;  %vm280_vm15 = vcmp.eq.s32.totalorder %v1381_v37, 21  ;;  %v282_v9 = vstv %s1495_s13  ;;  %vm287_vm0 = vcmp.eq.s32.totalorder %v1373_v32, 22  ;;  %s1697_s13 = sld [smem:[#allocation7 + $0x32]] }
  0x47   :  { %v283_v10 = vsel %vm277_vm12, %v282_v9, %v273_v5  ;;  %v284_v11 = vsel %vm278_vm13, %v282_v9, %v274_v6  ;;  %v285_v12 = vsel %vm279_vm14, %v282_v9, %v275_v7  ;;  %v286_v13 = vsel %vm280_vm15, %v282_v9, %v276_v8 }
  0x48   :  { %vm288_vm1 = vcmp.eq.s32.totalorder %v1375_v34, 22  ;;  %vm289_vm2 = vcmp.eq.s32.totalorder %v1378_v35, 22  ;;  %vm290_vm3 = vcmp.eq.s32.totalorder %v1381_v37, 22  ;;  %v292_v14 = vstv %s1501_s14  ;;  %s1707_s14 = sld [smem:[#allocation7 + $0x33]] }
  0x49   :  { %v293_v15 = vsel %vm287_vm0, %v292_v14, %v283_v10  ;;  %v294_v16 = vsel %vm288_vm1, %v292_v14, %v284_v11  ;;  %v295_v17 = vsel %vm289_vm2, %v292_v14, %v285_v12  ;;  %v296_v18 = vsel %vm290_vm3, %v292_v14, %v286_v13 }
  0x4a   :  { %vm297_vm4 = vcmp.eq.s32.totalorder %v1373_v32, 23  ;;  %vm298_vm5 = vcmp.eq.s32.totalorder %v1375_v34, 23  ;;  %vm299_vm6 = vcmp.eq.s32.totalorder %v1378_v35, 23  ;;  %vm300_vm7 = vcmp.eq.s32.totalorder %v1381_v37, 23 }
  0x4b   :  { %v302_v19 = vstv %s1511_s15  ;;  %vm307_vm8 = vcmp.eq.s32.totalorder %v1373_v32, 24  ;;  %vm308_vm9 = vcmp.eq.s32.totalorder %v1375_v34, 24  ;;  %vm309_vm10 = vcmp.eq.s32.totalorder %v1378_v35, 24  ;;  %s1713_s15 = sld [smem:[#allocation7 + $0x34]] }
  0x4c   :  { %v303_v20 = vsel %vm297_vm4, %v302_v19, %v293_v15  ;;  %v304_v21 = vsel %vm298_vm5, %v302_v19, %v294_v16  ;;  %v305_v22 = vsel %vm299_vm6, %v302_v19, %v295_v17  ;;  %v306_v23 = vsel %vm300_vm7, %v302_v19, %v296_v18 }
  0x4d   :  { %vm310_vm11 = vcmp.eq.s32.totalorder %v1381_v37, 24  ;;  %v312_v24 = vstv %s1517_s16  ;;  %vm317_vm12 = vcmp.eq.s32.totalorder %v1373_v32, 25  ;;  %vm318_vm13 = vcmp.eq.s32.totalorder %v1375_v34, 25  ;;  %s1719_s16 = sld [smem:[#allocation7 + $0x35]] }
  0x4e   :  { %v313_v25 = vsel %vm307_vm8, %v312_v24, %v303_v20  ;;  %v314_v26 = vsel %vm308_vm9, %v312_v24, %v304_v21  ;;  %v315_v27 = vsel %vm309_vm10, %v312_v24, %v305_v22  ;;  %v316_v28 = vsel %vm310_vm11, %v312_v24, %v306_v23 }
  0x4f   :  { %vm319_vm14 = vcmp.eq.s32.totalorder %v1378_v35, 25  ;;  %vm320_vm15 = vcmp.eq.s32.totalorder %v1381_v37, 25  ;;  %v322_v29 = vstv %s1523_s17  ;;  %vm327_vm0 = vcmp.eq.s32.totalorder %v1373_v32, 26  ;;  %s1725_s17 = sld [smem:[#allocation7 + $0x36]] }
  0x50   :  { %v323_v30 = vsel %vm317_vm12, %v322_v29, %v313_v25  ;;  %v324_v31 = vsel %vm318_vm13, %v322_v29, %v314_v26  ;;  %v325_v33 = vsel %vm319_vm14, %v322_v29, %v315_v27  ;;  %v326_v36 = vsel %vm320_vm15, %v322_v29, %v316_v28 }
  0x51   :  { %vm328_vm1 = vcmp.eq.s32.totalorder %v1375_v34, 26  ;;  %vm329_vm2 = vcmp.eq.s32.totalorder %v1378_v35, 26  ;;  %vm330_vm3 = vcmp.eq.s32.totalorder %v1381_v37, 26  ;;  %v332_v38 = vstv %s1529_s18  ;;  %s1735_s18 = sld [smem:[#allocation7 + $0x37]] }
  0x52   :  { %v333_v39 = vsel %vm327_vm0, %v332_v38, %v323_v30  ;;  %v334_v40 = vsel %vm328_vm1, %v332_v38, %v324_v31  ;;  %v335_v41 = vsel %vm329_vm2, %v332_v38, %v325_v33  ;;  %v336_v42 = vsel %vm330_vm3, %v332_v38, %v326_v36 }
  0x53   :  { %vm337_vm4 = vcmp.eq.s32.totalorder %v1373_v32, 27  ;;  %vm338_vm5 = vcmp.eq.s32.totalorder %v1375_v34, 27  ;;  %vm339_vm6 = vcmp.eq.s32.totalorder %v1378_v35, 27  ;;  %vm340_vm7 = vcmp.eq.s32.totalorder %v1381_v37, 27 }
  0x54   :  { %v342_v43 = vstv %s1539_s19  ;;  %vm347_vm8 = vcmp.eq.s32.totalorder %v1373_v32, 28  ;;  %vm348_vm9 = vcmp.eq.s32.totalorder %v1375_v34, 28  ;;  %vm349_vm10 = vcmp.eq.s32.totalorder %v1378_v35, 28  ;;  %s1741_s19 = sld [smem:[#allocation7 + $0x38]] }
  0x55   :  { %v343_v44 = vsel %vm337_vm4, %v342_v43, %v333_v39  ;;  %v344_v45 = vsel %vm338_vm5, %v342_v43, %v334_v40  ;;  %v345_v46 = vsel %vm339_vm6, %v342_v43, %v335_v41  ;;  %v346_v47 = vsel %vm340_vm7, %v342_v43, %v336_v42 }
  0x56   :  { %vm350_vm11 = vcmp.eq.s32.totalorder %v1381_v37, 28  ;;  %v352_v48 = vstv %s1545_s20  ;;  %vm357_vm12 = vcmp.eq.s32.totalorder %v1373_v32, 29  ;;  %vm358_vm13 = vcmp.eq.s32.totalorder %v1375_v34, 29  ;;  %s1747_s20 = sld [smem:[#allocation7 + $0x39]] }
  0x57   :  { %v353_v49 = vsel %vm347_vm8, %v352_v48, %v343_v44  ;;  %v354_v50 = vsel %vm348_vm9, %v352_v48, %v344_v45  ;;  %v355_v51 = vsel %vm349_vm10, %v352_v48, %v345_v46  ;;  %v356_v52 = vsel %vm350_vm11, %v352_v48, %v346_v47 }
  0x58   :  { %vm359_vm14 = vcmp.eq.s32.totalorder %v1378_v35, 29  ;;  %vm360_vm15 = vcmp.eq.s32.totalorder %v1381_v37, 29  ;;  %v362_v53 = vstv %s1551_s0  ;;  %vm367_vm0 = vcmp.eq.s32.totalorder %v1373_v32, 30  ;;  %s1753_s0 = sld [smem:[#allocation7 + $0x3a]] }
  0x59   :  { %v363_v54 = vsel %vm357_vm12, %v362_v53, %v353_v49  ;;  %v364_v55 = vsel %vm358_vm13, %v362_v53, %v354_v50  ;;  %v365_v56 = vsel %vm359_vm14, %v362_v53, %v355_v51  ;;  %v366_v57 = vsel %vm360_vm15, %v362_v53, %v356_v52 }
  0x5a   :  { %vm368_vm1 = vcmp.eq.s32.totalorder %v1375_v34, 30  ;;  %vm369_vm2 = vcmp.eq.s32.totalorder %v1378_v35, 30  ;;  %vm370_vm3 = vcmp.eq.s32.totalorder %v1381_v37, 30  ;;  %v372_v58 = vstv %s1557_s21  ;;  %s1763_s21 = sld [smem:[#allocation7 + $0x3b]] }
  0x5b   :  { %v373_v59 = vsel %vm367_vm0, %v372_v58, %v363_v54  ;;  %v374_v60 = vsel %vm368_vm1, %v372_v58, %v364_v55  ;;  %v375_v61 = vsel %vm369_vm2, %v372_v58, %v365_v56  ;;  %v376_v62 = vsel %vm370_vm3, %v372_v58, %v366_v57 }
  0x5c   :  { %vm377_vm4 = vcmp.eq.s32.totalorder %v1373_v32, 31  ;;  %vm378_vm5 = vcmp.eq.s32.totalorder %v1375_v34, 31  ;;  %vm379_vm6 = vcmp.eq.s32.totalorder %v1378_v35, 31  ;;  %vm380_vm7 = vcmp.eq.s32.totalorder %v1381_v37, 31 }
  0x5d   :  { %v382_v63 = vstv %s1567_s1  ;;  %vm387_vm8 = vcmp.eq.s32.totalorder %v1373_v32, 32  ;;  %vm388_vm9 = vcmp.eq.s32.totalorder %v1375_v34, 32  ;;  %vm389_vm10 = vcmp.eq.s32.totalorder %v1378_v35, 32  ;;  %s1769_s1 = sld [smem:[#allocation7 + $0x3c]] }
  0x5e   :  { %v383_v0 = vsel %vm377_vm4, %v382_v63, %v373_v59  ;;  %v384_v1 = vsel %vm378_vm5, %v382_v63, %v374_v60  ;;  %v385_v2 = vsel %vm379_vm6, %v382_v63, %v375_v61  ;;  %v386_v3 = vsel %vm380_vm7, %v382_v63, %v376_v62 }
  0x5f   :  { %vm390_vm11 = vcmp.eq.s32.totalorder %v1381_v37, 32  ;;  %v392_v4 = vstv %s1573_s22  ;;  %vm397_vm12 = vcmp.eq.s32.totalorder %v1373_v32, 33  ;;  %vm398_vm13 = vcmp.eq.s32.totalorder %v1375_v34, 33  ;;  %s1775_s22 = sld [smem:[#allocation7 + $0x3d]] }
  0x60   :  { %v393_v5 = vsel %vm387_vm8, %v392_v4, %v383_v0  ;;  %v394_v6 = vsel %vm388_vm9, %v392_v4, %v384_v1  ;;  %v395_v7 = vsel %vm389_vm10, %v392_v4, %v385_v2  ;;  %v396_v8 = vsel %vm390_vm11, %v392_v4, %v386_v3 }
  0x61   :  { %vm399_vm14 = vcmp.eq.s32.totalorder %v1378_v35, 33  ;;  %vm400_vm15 = vcmp.eq.s32.totalorder %v1381_v37, 33  ;;  %v402_v9 = vstv %s1579_s23  ;;  %vm407_vm0 = vcmp.eq.s32.totalorder %v1373_v32, 34  ;;  %s1781_s23 = sld [smem:[#allocation7 + $0x3e]] }
  0x62   :  { %v403_v10 = vsel %vm397_vm12, %v402_v9, %v393_v5  ;;  %v404_v11 = vsel %vm398_vm13, %v402_v9, %v394_v6  ;;  %v405_v12 = vsel %vm399_vm14, %v402_v9, %v395_v7  ;;  %v406_v13 = vsel %vm400_vm15, %v402_v9, %v396_v8 }
  0x63   :  { %vm408_vm1 = vcmp.eq.s32.totalorder %v1375_v34, 34  ;;  %vm409_vm2 = vcmp.eq.s32.totalorder %v1378_v35, 34  ;;  %vm410_vm3 = vcmp.eq.s32.totalorder %v1381_v37, 34  ;;  %v412_v14 = vstv %s1585_s24  ;;  %s1791_s24 = sld [smem:[#allocation7 + $0x3f]] }
  0x64   :  { %v413_v15 = vsel %vm407_vm0, %v412_v14, %v403_v10  ;;  %v414_v16 = vsel %vm408_vm1, %v412_v14, %v404_v11  ;;  %v415_v17 = vsel %vm409_vm2, %v412_v14, %v405_v12  ;;  %v416_v18 = vsel %vm410_vm3, %v412_v14, %v406_v13 }
  0x65   :  { %vm417_vm4 = vcmp.eq.s32.totalorder %v1373_v32, 35  ;;  %vm418_vm5 = vcmp.eq.s32.totalorder %v1375_v34, 35  ;;  %vm419_vm6 = vcmp.eq.s32.totalorder %v1378_v35, 35  ;;  %vm420_vm7 = vcmp.eq.s32.totalorder %v1381_v37, 35 }
  0x66   :  { %v422_v19 = vstv %s1595_s25  ;;  %vm427_vm8 = vcmp.eq.s32.totalorder %v1373_v32, 36  ;;  %vm428_vm9 = vcmp.eq.s32.totalorder %v1375_v34, 36  ;;  %vm429_vm10 = vcmp.eq.s32.totalorder %v1378_v35, 36  ;;  %s1797_s25 = sld [smem:[#allocation7 + $0x40]] }
  0x67   :  { %v423_v20 = vsel %vm417_vm4, %v422_v19, %v413_v15  ;;  %v424_v21 = vsel %vm418_vm5, %v422_v19, %v414_v16  ;;  %v425_v22 = vsel %vm419_vm6, %v422_v19, %v415_v17  ;;  %v426_v23 = vsel %vm420_vm7, %v422_v19, %v416_v18 }
  0x68   :  { %vm430_vm11 = vcmp.eq.s32.totalorder %v1381_v37, 36  ;;  %v432_v24 = vstv %s1601_s26  ;;  %vm437_vm12 = vcmp.eq.s32.totalorder %v1373_v32, 37  ;;  %vm438_vm13 = vcmp.eq.s32.totalorder %v1375_v34, 37  ;;  %s1803_s26 = sld [smem:[#allocation7 + $0x41]] }
  0x69   :  { %v433_v25 = vsel %vm427_vm8, %v432_v24, %v423_v20  ;;  %v434_v26 = vsel %vm428_vm9, %v432_v24, %v424_v21  ;;  %v435_v27 = vsel %vm429_vm10, %v432_v24, %v425_v22  ;;  %v436_v28 = vsel %vm430_vm11, %v432_v24, %v426_v23 }
  0x6a   :  { %vm439_vm14 = vcmp.eq.s32.totalorder %v1378_v35, 37  ;;  %vm440_vm15 = vcmp.eq.s32.totalorder %v1381_v37, 37  ;;  %v442_v29 = vstv %s1607_s27  ;;  %vm447_vm0 = vcmp.eq.s32.totalorder %v1373_v32, 38  ;;  %s1809_s27 = sld [smem:[#allocation7 + $0x42]] }
  0x6b   :  { %v443_v30 = vsel %vm437_vm12, %v442_v29, %v433_v25  ;;  %v444_v31 = vsel %vm438_vm13, %v442_v29, %v434_v26  ;;  %v445_v33 = vsel %vm439_vm14, %v442_v29, %v435_v27  ;;  %v446_v36 = vsel %vm440_vm15, %v442_v29, %v436_v28 }
  0x6c   :  { %vm448_vm1 = vcmp.eq.s32.totalorder %v1375_v34, 38  ;;  %vm449_vm2 = vcmp.eq.s32.totalorder %v1378_v35, 38  ;;  %vm450_vm3 = vcmp.eq.s32.totalorder %v1381_v37, 38  ;;  %v452_v38 = vstv %s1613_s28  ;;  %s1819_s28 = sld [smem:[#allocation7 + $0x43]] }
  0x6d   :  { %v453_v39 = vsel %vm447_vm0, %v452_v38, %v443_v30  ;;  %v454_v40 = vsel %vm448_vm1, %v452_v38, %v444_v31  ;;  %v455_v41 = vsel %vm449_vm2, %v452_v38, %v445_v33  ;;  %v456_v42 = vsel %vm450_vm3, %v452_v38, %v446_v36 }
  0x6e   :  { %vm457_vm4 = vcmp.eq.s32.totalorder %v1373_v32, 39  ;;  %vm458_vm5 = vcmp.eq.s32.totalorder %v1375_v34, 39  ;;  %vm459_vm6 = vcmp.eq.s32.totalorder %v1378_v35, 39  ;;  %vm460_vm7 = vcmp.eq.s32.totalorder %v1381_v37, 39 }
  0x6f   :  { %v462_v43 = vstv %s1623_s29  ;;  %vm467_vm8 = vcmp.eq.s32.totalorder %v1373_v32, 40  ;;  %vm468_vm9 = vcmp.eq.s32.totalorder %v1375_v34, 40  ;;  %vm469_vm10 = vcmp.eq.s32.totalorder %v1378_v35, 40  ;;  %s1825_s29 = sld [smem:[#allocation7 + $0x44]] }
  0x70   :  { %v463_v44 = vsel %vm457_vm4, %v462_v43, %v453_v39  ;;  %v464_v45 = vsel %vm458_vm5, %v462_v43, %v454_v40  ;;  %v465_v46 = vsel %vm459_vm6, %v462_v43, %v455_v41  ;;  %v466_v47 = vsel %vm460_vm7, %v462_v43, %v456_v42 }
  0x71   :  { %vm470_vm11 = vcmp.eq.s32.totalorder %v1381_v37, 40  ;;  %v472_v48 = vstv %s1629_s30  ;;  %vm477_vm12 = vcmp.eq.s32.totalorder %v1373_v32, 41  ;;  %vm478_vm13 = vcmp.eq.s32.totalorder %v1375_v34, 41  ;;  %s1831_s30 = sld [smem:[#allocation7 + $0x45]] }
  0x72   :  { %v473_v49 = vsel %vm467_vm8, %v472_v48, %v463_v44  ;;  %v474_v50 = vsel %vm468_vm9, %v472_v48, %v464_v45  ;;  %v475_v51 = vsel %vm469_vm10, %v472_v48, %v465_v46  ;;  %v476_v52 = vsel %vm470_vm11, %v472_v48, %v466_v47 }
  0x73   :  { %vm479_vm14 = vcmp.eq.s32.totalorder %v1378_v35, 41  ;;  %vm480_vm15 = vcmp.eq.s32.totalorder %v1381_v37, 41  ;;  %v482_v53 = vstv %s1635_s4  ;;  %vm487_vm0 = vcmp.eq.s32.totalorder %v1373_v32, 42  ;;  %s1837_s4 = sld [smem:[#allocation7 + $0x46]] }
  0x74   :  { %v483_v54 = vsel %vm477_vm12, %v482_v53, %v473_v49  ;;  %v484_v55 = vsel %vm478_vm13, %v482_v53, %v474_v50  ;;  %v485_v56 = vsel %vm479_vm14, %v482_v53, %v475_v51  ;;  %v486_v57 = vsel %vm480_vm15, %v482_v53, %v476_v52 }
  0x75   :  { %vm488_vm1 = vcmp.eq.s32.totalorder %v1375_v34, 42  ;;  %vm489_vm2 = vcmp.eq.s32.totalorder %v1378_v35, 42  ;;  %vm490_vm3 = vcmp.eq.s32.totalorder %v1381_v37, 42  ;;  %v492_v58 = vstv %s1641_s5  ;;  %s1847_s5 = sld [smem:[#allocation7 + $0x47]] }
  0x76   :  { %v493_v59 = vsel %vm487_vm0, %v492_v58, %v483_v54  ;;  %v494_v60 = vsel %vm488_vm1, %v492_v58, %v484_v55  ;;  %v495_v61 = vsel %vm489_vm2, %v492_v58, %v485_v56  ;;  %v496_v62 = vsel %vm490_vm3, %v492_v58, %v486_v57 }
  0x77   :  { %vm497_vm4 = vcmp.eq.s32.totalorder %v1373_v32, 43  ;;  %vm498_vm5 = vcmp.eq.s32.totalorder %v1375_v34, 43  ;;  %vm499_vm6 = vcmp.eq.s32.totalorder %v1378_v35, 43  ;;  %vm500_vm7 = vcmp.eq.s32.totalorder %v1381_v37, 43 }
  0x78   :  { %v502_v63 = vstv %s1651_s6  ;;  %vm507_vm8 = vcmp.eq.s32.totalorder %v1373_v32, 44  ;;  %vm508_vm9 = vcmp.eq.s32.totalorder %v1375_v34, 44  ;;  %vm509_vm10 = vcmp.eq.s32.totalorder %v1378_v35, 44  ;;  %s1853_s6 = sld [smem:[#allocation7 + $0x48]] }
  0x79   :  { %v503_v0 = vsel %vm497_vm4, %v502_v63, %v493_v59  ;;  %v504_v1 = vsel %vm498_vm5, %v502_v63, %v494_v60  ;;  %v505_v2 = vsel %vm499_vm6, %v502_v63, %v495_v61  ;;  %v506_v3 = vsel %vm500_vm7, %v502_v63, %v496_v62 }
  0x7a   :  { %vm510_vm11 = vcmp.eq.s32.totalorder %v1381_v37, 44  ;;  %v512_v4 = vstv %s1657_s7  ;;  %vm517_vm12 = vcmp.eq.s32.totalorder %v1373_v32, 45  ;;  %vm518_vm13 = vcmp.eq.s32.totalorder %v1375_v34, 45  ;;  %s1208_s7 = sld [smem:[#allocation7 + $0x49]] }
  0x7b   :  { %v513_v5 = vsel %vm507_vm8, %v512_v4, %v503_v0  ;;  %v514_v6 = vsel %vm508_vm9, %v512_v4, %v504_v1  ;;  %v515_v7 = vsel %vm509_vm10, %v512_v4, %v505_v2  ;;  %v516_v8 = vsel %vm510_vm11, %v512_v4, %v506_v3 }
  0x7c   :  { %vm519_vm14 = vcmp.eq.s32.totalorder %v1378_v35, 45  ;;  %vm520_vm15 = vcmp.eq.s32.totalorder %v1381_v37, 45  ;;  %v522_v9 = vstv %s1663_s8  ;;  %vm527_vm0 = vcmp.eq.s32.totalorder %v1373_v32, 46  ;;  %s1209_s8 = sld [smem:[#allocation7 + $0x4a]] }
  0x7d   :  { %v523_v10 = vsel %vm517_vm12, %v522_v9, %v513_v5  ;;  %v524_v11 = vsel %vm518_vm13, %v522_v9, %v514_v6  ;;  %v525_v12 = vsel %vm519_vm14, %v522_v9, %v515_v7  ;;  %v526_v13 = vsel %vm520_vm15, %v522_v9, %v516_v8 }
  0x7e   :  { %vm528_vm1 = vcmp.eq.s32.totalorder %v1375_v34, 46  ;;  %vm529_vm2 = vcmp.eq.s32.totalorder %v1378_v35, 46  ;;  %vm530_vm3 = vcmp.eq.s32.totalorder %v1381_v37, 46  ;;  %v532_v14 = vstv %s1669_s9  ;;  %s1210_s9 = sld [smem:[#allocation7 + $0x4b]] }
  0x7f   :  { %v533_v15 = vsel %vm527_vm0, %v532_v14, %v523_v10  ;;  %v534_v16 = vsel %vm528_vm1, %v532_v14, %v524_v11  ;;  %v535_v17 = vsel %vm529_vm2, %v532_v14, %v525_v12  ;;  %v536_v18 = vsel %vm530_vm3, %v532_v14, %v526_v13 }
  0x80   :  { %vm537_vm4 = vcmp.eq.s32.totalorder %v1373_v32, 47  ;;  %vm538_vm5 = vcmp.eq.s32.totalorder %v1375_v34, 47  ;;  %vm539_vm6 = vcmp.eq.s32.totalorder %v1378_v35, 47  ;;  %vm540_vm7 = vcmp.eq.s32.totalorder %v1381_v37, 47 }
  0x81   :  { %v542_v19 = vstv %s1679_s10  ;;  %vm547_vm8 = vcmp.eq.s32.totalorder %v1373_v32, 48  ;;  %vm548_vm9 = vcmp.eq.s32.totalorder %v1375_v34, 48  ;;  %vm549_vm10 = vcmp.eq.s32.totalorder %v1378_v35, 48  ;;  %s1211_s10 = sld [smem:[#allocation7 + $0x4c]] }
  0x82   :  { %v543_v20 = vsel %vm537_vm4, %v542_v19, %v533_v15  ;;  %v544_v21 = vsel %vm538_vm5, %v542_v19, %v534_v16  ;;  %v545_v22 = vsel %vm539_vm6, %v542_v19, %v535_v17  ;;  %v546_v23 = vsel %vm540_vm7, %v542_v19, %v536_v18 }
  0x83   :  { %vm550_vm11 = vcmp.eq.s32.totalorder %v1381_v37, 48  ;;  %v552_v24 = vstv %s1685_s11  ;;  %vm557_vm12 = vcmp.eq.s32.totalorder %v1373_v32, 49  ;;  %vm558_vm13 = vcmp.eq.s32.totalorder %v1375_v34, 49  ;;  %s1212_s11 = sld [smem:[#allocation7 + $0x4d]] }
  0x84   :  { %v553_v25 = vsel %vm547_vm8, %v552_v24, %v543_v20  ;;  %v554_v26 = vsel %vm548_vm9, %v552_v24, %v544_v21  ;;  %v555_v27 = vsel %vm549_vm10, %v552_v24, %v545_v22  ;;  %v556_v28 = vsel %vm550_vm11, %v552_v24, %v546_v23 }
  0x85   :  { %vm559_vm14 = vcmp.eq.s32.totalorder %v1378_v35, 49  ;;  %vm560_vm15 = vcmp.eq.s32.totalorder %v1381_v37, 49  ;;  %v562_v29 = vstv %s1691_s12  ;;  %vm567_vm0 = vcmp.eq.s32.totalorder %v1373_v32, 50  ;;  %s1213_s12 = sld [smem:[#allocation7 + $0x4e]] }
  0x86   :  { %v563_v30 = vsel %vm557_vm12, %v562_v29, %v553_v25  ;;  %v564_v31 = vsel %vm558_vm13, %v562_v29, %v554_v26  ;;  %v565_v33 = vsel %vm559_vm14, %v562_v29, %v555_v27  ;;  %v566_v36 = vsel %vm560_vm15, %v562_v29, %v556_v28 }
  0x87   :  { %vm568_vm1 = vcmp.eq.s32.totalorder %v1375_v34, 50  ;;  %vm569_vm2 = vcmp.eq.s32.totalorder %v1378_v35, 50  ;;  %vm570_vm3 = vcmp.eq.s32.totalorder %v1381_v37, 50  ;;  %v572_v38 = vstv %s1697_s13  ;;  %s1214_s13 = sld [smem:[#allocation7 + $0x4f]] }
  0x88   :  { %v573_v39 = vsel %vm567_vm0, %v572_v38, %v563_v30  ;;  %v574_v40 = vsel %vm568_vm1, %v572_v38, %v564_v31  ;;  %v575_v41 = vsel %vm569_vm2, %v572_v38, %v565_v33  ;;  %v576_v42 = vsel %vm570_vm3, %v572_v38, %v566_v36 }
  0x89   :  { %vm577_vm4 = vcmp.eq.s32.totalorder %v1373_v32, 51  ;;  %vm578_vm5 = vcmp.eq.s32.totalorder %v1375_v34, 51  ;;  %vm579_vm6 = vcmp.eq.s32.totalorder %v1378_v35, 51  ;;  %vm580_vm7 = vcmp.eq.s32.totalorder %v1381_v37, 51 }
  0x8a   :  { %v582_v43 = vstv %s1707_s14  ;;  %vm587_vm8 = vcmp.eq.s32.totalorder %v1373_v32, 52  ;;  %vm588_vm9 = vcmp.eq.s32.totalorder %v1375_v34, 52  ;;  %vm589_vm10 = vcmp.eq.s32.totalorder %v1378_v35, 52  ;;  %s1215_s14 = sld [smem:[#allocation7 + $0x50]] }
  0x8b   :  { %v583_v44 = vsel %vm577_vm4, %v582_v43, %v573_v39  ;;  %v584_v45 = vsel %vm578_vm5, %v582_v43, %v574_v40  ;;  %v585_v46 = vsel %vm579_vm6, %v582_v43, %v575_v41  ;;  %v586_v47 = vsel %vm580_vm7, %v582_v43, %v576_v42 }
  0x8c   :  { %vm590_vm11 = vcmp.eq.s32.totalorder %v1381_v37, 52  ;;  %v592_v48 = vstv %s1713_s15  ;;  %vm597_vm12 = vcmp.eq.s32.totalorder %v1373_v32, 53  ;;  %vm598_vm13 = vcmp.eq.s32.totalorder %v1375_v34, 53  ;;  %s1216_s15 = sld [smem:[#allocation7 + $0x51]] }
  0x8d   :  { %v593_v49 = vsel %vm587_vm8, %v592_v48, %v583_v44  ;;  %v594_v50 = vsel %vm588_vm9, %v592_v48, %v584_v45  ;;  %v595_v51 = vsel %vm589_vm10, %v592_v48, %v585_v46  ;;  %v596_v52 = vsel %vm590_vm11, %v592_v48, %v586_v47 }
  0x8e   :  { %vm599_vm14 = vcmp.eq.s32.totalorder %v1378_v35, 53  ;;  %vm600_vm15 = vcmp.eq.s32.totalorder %v1381_v37, 53  ;;  %v602_v53 = vstv %s1719_s16  ;;  %vm607_vm0 = vcmp.eq.s32.totalorder %v1373_v32, 54  ;;  %s1217_s16 = sld [smem:[#allocation7 + $0x52]] }
  0x8f   :  { %v603_v54 = vsel %vm597_vm12, %v602_v53, %v593_v49  ;;  %v604_v55 = vsel %vm598_vm13, %v602_v53, %v594_v50  ;;  %v605_v56 = vsel %vm599_vm14, %v602_v53, %v595_v51  ;;  %v606_v57 = vsel %vm600_vm15, %v602_v53, %v596_v52 }
  0x90   :  { %vm608_vm1 = vcmp.eq.s32.totalorder %v1375_v34, 54  ;;  %vm609_vm2 = vcmp.eq.s32.totalorder %v1378_v35, 54  ;;  %vm610_vm3 = vcmp.eq.s32.totalorder %v1381_v37, 54  ;;  %v612_v58 = vstv %s1725_s17  ;;  %s1218_s17 = sld [smem:[#allocation7 + $0x53]] }
  0x91   :  { %v613_v59 = vsel %vm607_vm0, %v612_v58, %v603_v54  ;;  %v614_v60 = vsel %vm608_vm1, %v612_v58, %v604_v55  ;;  %v615_v61 = vsel %vm609_vm2, %v612_v58, %v605_v56  ;;  %v616_v62 = vsel %vm610_vm3, %v612_v58, %v606_v57 }
  0x92   :  { %vm617_vm4 = vcmp.eq.s32.totalorder %v1373_v32, 55  ;;  %vm618_vm5 = vcmp.eq.s32.totalorder %v1375_v34, 55  ;;  %vm619_vm6 = vcmp.eq.s32.totalorder %v1378_v35, 55  ;;  %vm620_vm7 = vcmp.eq.s32.totalorder %v1381_v37, 55 }
  0x93   :  { %v622_v63 = vstv %s1735_s18  ;;  %vm627_vm8 = vcmp.eq.s32.totalorder %v1373_v32, 56  ;;  %vm628_vm9 = vcmp.eq.s32.totalorder %v1375_v34, 56  ;;  %vm629_vm10 = vcmp.eq.s32.totalorder %v1378_v35, 56  ;;  %s1219_s18 = sld [smem:[#allocation7 + $0x54]] }
  0x94   :  { %v623_v0 = vsel %vm617_vm4, %v622_v63, %v613_v59  ;;  %v624_v1 = vsel %vm618_vm5, %v622_v63, %v614_v60  ;;  %v625_v2 = vsel %vm619_vm6, %v622_v63, %v615_v61  ;;  %v626_v3 = vsel %vm620_vm7, %v622_v63, %v616_v62 }
  0x95   :  { %vm630_vm11 = vcmp.eq.s32.totalorder %v1381_v37, 56  ;;  %v632_v4 = vstv %s1741_s19  ;;  %vm637_vm12 = vcmp.eq.s32.totalorder %v1373_v32, 57  ;;  %vm638_vm13 = vcmp.eq.s32.totalorder %v1375_v34, 57  ;;  %s1220_s19 = sld [smem:[#allocation7 + $0x55]] }
  0x96   :  { %v633_v5 = vsel %vm627_vm8, %v632_v4, %v623_v0  ;;  %v634_v6 = vsel %vm628_vm9, %v632_v4, %v624_v1  ;;  %v635_v7 = vsel %vm629_vm10, %v632_v4, %v625_v2  ;;  %v636_v8 = vsel %vm630_vm11, %v632_v4, %v626_v3 }
  0x97   :  { %vm639_vm14 = vcmp.eq.s32.totalorder %v1378_v35, 57  ;;  %vm640_vm15 = vcmp.eq.s32.totalorder %v1381_v37, 57  ;;  %v642_v9 = vstv %s1747_s20  ;;  %vm647_vm0 = vcmp.eq.s32.totalorder %v1373_v32, 58  ;;  %s1221_s20 = sld [smem:[#allocation7 + $0x56]] }
  0x98   :  { %v643_v10 = vsel %vm637_vm12, %v642_v9, %v633_v5  ;;  %v644_v11 = vsel %vm638_vm13, %v642_v9, %v634_v6  ;;  %v645_v12 = vsel %vm639_vm14, %v642_v9, %v635_v7  ;;  %v646_v13 = vsel %vm640_vm15, %v642_v9, %v636_v8 }
  0x99   :  { %vm648_vm1 = vcmp.eq.s32.totalorder %v1375_v34, 58  ;;  %vm649_vm2 = vcmp.eq.s32.totalorder %v1378_v35, 58  ;;  %vm650_vm3 = vcmp.eq.s32.totalorder %v1381_v37, 58  ;;  %v652_v14 = vstv %s1753_s0  ;;  %s1222_s0 = sld [smem:[#allocation7 + $0x57]] }
  0x9a   :  { %v653_v15 = vsel %vm647_vm0, %v652_v14, %v643_v10  ;;  %v654_v16 = vsel %vm648_vm1, %v652_v14, %v644_v11  ;;  %v655_v17 = vsel %vm649_vm2, %v652_v14, %v645_v12  ;;  %v656_v18 = vsel %vm650_vm3, %v652_v14, %v646_v13 }
  0x9b   :  { %vm657_vm4 = vcmp.eq.s32.totalorder %v1373_v32, 59  ;;  %vm658_vm5 = vcmp.eq.s32.totalorder %v1375_v34, 59  ;;  %vm659_vm6 = vcmp.eq.s32.totalorder %v1378_v35, 59  ;;  %vm660_vm7 = vcmp.eq.s32.totalorder %v1381_v37, 59 }
  0x9c   :  { %v662_v19 = vstv %s1763_s21  ;;  %vm667_vm8 = vcmp.eq.s32.totalorder %v1373_v32, 60  ;;  %vm668_vm9 = vcmp.eq.s32.totalorder %v1375_v34, 60  ;;  %vm669_vm10 = vcmp.eq.s32.totalorder %v1378_v35, 60  ;;  %s1223_s21 = sld [smem:[#allocation7 + $0x58]] }
  0x9d   :  { %v663_v20 = vsel %vm657_vm4, %v662_v19, %v653_v15  ;;  %v664_v21 = vsel %vm658_vm5, %v662_v19, %v654_v16  ;;  %v665_v22 = vsel %vm659_vm6, %v662_v19, %v655_v17  ;;  %v666_v23 = vsel %vm660_vm7, %v662_v19, %v656_v18 }
  0x9e   :  { %vm670_vm11 = vcmp.eq.s32.totalorder %v1381_v37, 60  ;;  %v672_v24 = vstv %s1769_s1  ;;  %vm677_vm12 = vcmp.eq.s32.totalorder %v1373_v32, 61  ;;  %vm678_vm13 = vcmp.eq.s32.totalorder %v1375_v34, 61  ;;  %s1224_s1 = sld [smem:[#allocation7 + $0x59]] }
  0x9f   :  { %v673_v25 = vsel %vm667_vm8, %v672_v24, %v663_v20  ;;  %v674_v26 = vsel %vm668_vm9, %v672_v24, %v664_v21  ;;  %v675_v27 = vsel %vm669_vm10, %v672_v24, %v665_v22  ;;  %v676_v28 = vsel %vm670_vm11, %v672_v24, %v666_v23 }
  0xa0   :  { %vm679_vm14 = vcmp.eq.s32.totalorder %v1378_v35, 61  ;;  %vm680_vm15 = vcmp.eq.s32.totalorder %v1381_v37, 61  ;;  %v682_v29 = vstv %s1775_s22  ;;  %vm687_vm0 = vcmp.eq.s32.totalorder %v1373_v32, 62  ;;  %s1225_s22 = sld [smem:[#allocation7 + $0x5a]] }
  0xa1   :  { %v683_v30 = vsel %vm677_vm12, %v682_v29, %v673_v25  ;;  %v684_v31 = vsel %vm678_vm13, %v682_v29, %v674_v26  ;;  %v685_v33 = vsel %vm679_vm14, %v682_v29, %v675_v27  ;;  %v686_v36 = vsel %vm680_vm15, %v682_v29, %v676_v28 }
  0xa2   :  { %vm688_vm1 = vcmp.eq.s32.totalorder %v1375_v34, 62  ;;  %vm689_vm2 = vcmp.eq.s32.totalorder %v1378_v35, 62  ;;  %vm690_vm3 = vcmp.eq.s32.totalorder %v1381_v37, 62  ;;  %v692_v38 = vstv %s1781_s23  ;;  %s1226_s23 = sld [smem:[#allocation7 + $0x5b]] }
  0xa3   :  { %v693_v39 = vsel %vm687_vm0, %v692_v38, %v683_v30  ;;  %v694_v40 = vsel %vm688_vm1, %v692_v38, %v684_v31  ;;  %v695_v41 = vsel %vm689_vm2, %v692_v38, %v685_v33  ;;  %v696_v42 = vsel %vm690_vm3, %v692_v38, %v686_v36 }
  0xa4   :  { %vm697_vm4 = vcmp.eq.s32.totalorder %v1373_v32, 63  ;;  %vm698_vm5 = vcmp.eq.s32.totalorder %v1375_v34, 63  ;;  %vm699_vm6 = vcmp.eq.s32.totalorder %v1378_v35, 63  ;;  %vm700_vm7 = vcmp.eq.s32.totalorder %v1381_v37, 63 }
  0xa5   :  { %v702_v43 = vstv %s1791_s24  ;;  %vm707_vm8 = vcmp.eq.s32.totalorder %v1373_v32, 64  ;;  %vm708_vm9 = vcmp.eq.s32.totalorder %v1375_v34, 64  ;;  %vm709_vm10 = vcmp.eq.s32.totalorder %v1378_v35, 64  ;;  %s1227_s24 = sld [smem:[#allocation7 + $0x5c]] }
  0xa6   :  { %v703_v44 = vsel %vm697_vm4, %v702_v43, %v693_v39  ;;  %v704_v45 = vsel %vm698_vm5, %v702_v43, %v694_v40  ;;  %v705_v46 = vsel %vm699_vm6, %v702_v43, %v695_v41  ;;  %v706_v47 = vsel %vm700_vm7, %v702_v43, %v696_v42 }
  0xa7   :  { %vm710_vm11 = vcmp.eq.s32.totalorder %v1381_v37, 64  ;;  %v712_v48 = vstv %s1797_s25  ;;  %vm717_vm12 = vcmp.eq.s32.totalorder %v1373_v32, 65  ;;  %vm718_vm13 = vcmp.eq.s32.totalorder %v1375_v34, 65  ;;  %s1228_s25 = sld [smem:[#allocation7 + $0x5d]] }
  0xa8   :  { %v713_v49 = vsel %vm707_vm8, %v712_v48, %v703_v44  ;;  %v714_v50 = vsel %vm708_vm9, %v712_v48, %v704_v45  ;;  %v715_v51 = vsel %vm709_vm10, %v712_v48, %v705_v46  ;;  %v716_v52 = vsel %vm710_vm11, %v712_v48, %v706_v47 }
  0xa9   :  { %vm719_vm14 = vcmp.eq.s32.totalorder %v1378_v35, 65  ;;  %vm720_vm15 = vcmp.eq.s32.totalorder %v1381_v37, 65  ;;  %v722_v53 = vstv %s1803_s26  ;;  %vm727_vm0 = vcmp.eq.s32.totalorder %v1373_v32, 66  ;;  %s1950_s26 = sld [smem:[#allocation7 + $0x5e]] }
  0xaa   :  { %v723_v54 = vsel %vm717_vm12, %v722_v53, %v713_v49  ;;  %v724_v55 = vsel %vm718_vm13, %v722_v53, %v714_v50  ;;  %v725_v56 = vsel %vm719_vm14, %v722_v53, %v715_v51  ;;  %v726_v57 = vsel %vm720_vm15, %v722_v53, %v716_v52 }
  0xab   :  { %vm728_vm1 = vcmp.eq.s32.totalorder %v1375_v34, 66  ;;  %vm729_vm2 = vcmp.eq.s32.totalorder %v1378_v35, 66  ;;  %vm730_vm3 = vcmp.eq.s32.totalorder %v1381_v37, 66  ;;  %v732_v58 = vstv %s1809_s27  ;;  %s1955_s27 = sld [smem:[#allocation7 + $0x5f]] }
  0xac   :  { %v733_v59 = vsel %vm727_vm0, %v732_v58, %v723_v54  ;;  %v734_v60 = vsel %vm728_vm1, %v732_v58, %v724_v55  ;;  %v735_v61 = vsel %vm729_vm2, %v732_v58, %v725_v56  ;;  %v736_v62 = vsel %vm730_vm3, %v732_v58, %v726_v57 }
  0xad   :  { %vm737_vm4 = vcmp.eq.s32.totalorder %v1373_v32, 67  ;;  %vm738_vm5 = vcmp.eq.s32.totalorder %v1375_v34, 67  ;;  %vm739_vm6 = vcmp.eq.s32.totalorder %v1378_v35, 67  ;;  %vm740_vm7 = vcmp.eq.s32.totalorder %v1381_v37, 67 }
  0xae   :  { %v742_v63 = vstv %s1819_s28  ;;  %vm747_vm8 = vcmp.eq.s32.totalorder %v1373_v32, 68  ;;  %vm748_vm9 = vcmp.eq.s32.totalorder %v1375_v34, 68  ;;  %vm749_vm10 = vcmp.eq.s32.totalorder %v1378_v35, 68  ;;  %s1980_s28 = sld [smem:[#allocation7 + $0x60]] }
  0xaf   :  { %v743_v0 = vsel %vm737_vm4, %v742_v63, %v733_v59  ;;  %v744_v1 = vsel %vm738_vm5, %v742_v63, %v734_v60  ;;  %v745_v2 = vsel %vm739_vm6, %v742_v63, %v735_v61  ;;  %v746_v3 = vsel %vm740_vm7, %v742_v63, %v736_v62 }
  0xb0   :  { %vm750_vm11 = vcmp.eq.s32.totalorder %v1381_v37, 68  ;;  %v752_v4 = vstv %s1825_s29  ;;  %vm757_vm12 = vcmp.eq.s32.totalorder %v1373_v32, 69  ;;  %vm758_vm13 = vcmp.eq.s32.totalorder %v1375_v34, 69  ;;  %s1990_s29 = sld [smem:[#allocation7 + $0x61]] }
  0xb1   :  { %v753_v5 = vsel %vm747_vm8, %v752_v4, %v743_v0  ;;  %v754_v6 = vsel %vm748_vm9, %v752_v4, %v744_v1  ;;  %v755_v7 = vsel %vm749_vm10, %v752_v4, %v745_v2  ;;  %v756_v8 = vsel %vm750_vm11, %v752_v4, %v746_v3 }
  0xb2   :  { %vm759_vm14 = vcmp.eq.s32.totalorder %v1378_v35, 69  ;;  %vm760_vm15 = vcmp.eq.s32.totalorder %v1381_v37, 69  ;;  %v762_v9 = vstv %s1831_s30  ;;  %vm767_vm0 = vcmp.eq.s32.totalorder %v1373_v32, 70  ;;  %s2000_s30 = sld [smem:[#allocation7 + $0x62]] }
  0xb3   :  { %v763_v10 = vsel %vm757_vm12, %v762_v9, %v753_v5  ;;  %v764_v11 = vsel %vm758_vm13, %v762_v9, %v754_v6  ;;  %v765_v12 = vsel %vm759_vm14, %v762_v9, %v755_v7  ;;  %v766_v13 = vsel %vm760_vm15, %v762_v9, %v756_v8 }
  0xb4   :  { %vm768_vm1 = vcmp.eq.s32.totalorder %v1375_v34, 70  ;;  %vm769_vm2 = vcmp.eq.s32.totalorder %v1378_v35, 70  ;;  %vm770_vm3 = vcmp.eq.s32.totalorder %v1381_v37, 70  ;;  %v772_v14 = vstv %s1837_s4  ;;  %s1234_s4 = sld [smem:[#allocation7 + $0x63]] }
  0xb5   :  { %v773_v15 = vsel %vm767_vm0, %v772_v14, %v763_v10  ;;  %v774_v16 = vsel %vm768_vm1, %v772_v14, %v764_v11  ;;  %v775_v17 = vsel %vm769_vm2, %v772_v14, %v765_v12  ;;  %v776_v18 = vsel %vm770_vm3, %v772_v14, %v766_v13 }
  0xb6   :  { %vm777_vm4 = vcmp.eq.s32.totalorder %v1373_v32, 71  ;;  %vm778_vm5 = vcmp.eq.s32.totalorder %v1375_v34, 71  ;;  %vm779_vm6 = vcmp.eq.s32.totalorder %v1378_v35, 71  ;;  %vm780_vm7 = vcmp.eq.s32.totalorder %v1381_v37, 71 }
  0xb7   :  { %v782_v19 = vstv %s1847_s5  ;;  %vm787_vm8 = vcmp.eq.s32.totalorder %v1373_v32, 72  ;;  %vm788_vm9 = vcmp.eq.s32.totalorder %v1375_v34, 72  ;;  %vm789_vm10 = vcmp.eq.s32.totalorder %v1378_v35, 72 }
  0xb8   :  { %v783_v20 = vsel %vm777_vm4, %v782_v19, %v773_v15  ;;  %v784_v21 = vsel %vm778_vm5, %v782_v19, %v774_v16  ;;  %v785_v22 = vsel %vm779_vm6, %v782_v19, %v775_v17  ;;  %v786_v23 = vsel %vm780_vm7, %v782_v19, %v776_v18 }
  0xb9   :  { %vm790_vm11 = vcmp.eq.s32.totalorder %v1381_v37, 72  ;;  %v792_v24 = vstv %s1853_s6  ;;  %vm797_vm12 = vcmp.eq.s32.totalorder %v1373_v32, 73  ;;  %vm798_vm13 = vcmp.eq.s32.totalorder %v1375_v34, 73 }
  0xba   :  { %v793_v25 = vsel %vm787_vm8, %v792_v24, %v783_v20  ;;  %v794_v26 = vsel %vm788_vm9, %v792_v24, %v784_v21  ;;  %v802_v27 = vstv %s1208_s7  ;;  %v795_v28 = vsel %vm789_vm10, %v792_v24, %v785_v22  ;;  %s1346_s7 = smov [#allocation8]  }
  0xbb   :  { %v796_v29 = vsel %vm790_vm11, %v792_v24, %v786_v23  ;;  %vm799_vm14 = vcmp.eq.s32.totalorder %v1378_v35, 73  ;;  %vm800_vm15 = vcmp.eq.s32.totalorder %v1381_v37, 73  ;;  %v803_v30 = vsel %vm797_vm12, %v802_v27, %v793_v25 }
  0xbc   :  { %vm807_vm0 = vcmp.eq.s32.totalorder %v1373_v32, 74  ;;  %v812_v31 = vstv %s1209_s8  ;;  %v804_v33 = vsel %vm798_vm13, %v802_v27, %v794_v26  ;;  %vm808_vm1 = vcmp.eq.s32.totalorder %v1375_v34, 74  ;;  %s1123_s8 = sshll.u32 %s1346_s7, 4  ;;  %s1124_s8 = int_to_ptr.vmem [resolvable:$true] %s1123_s8 }
  0xbd   :  { %v805_v36 = vsel %vm799_vm14, %v802_v27, %v795_v28  ;;  %v806_v38 = vsel %vm800_vm15, %v802_v27, %v796_v29  ;;  %vm809_vm2 = vcmp.eq.s32.totalorder %v1378_v35, 74  ;;  %vm810_vm3 = vcmp.eq.s32.totalorder %v1381_v37, 74 }
  0xbe   :  { %v813_v39 = vsel %vm807_vm0, %v812_v31, %v803_v30  ;;  %vm817_vm4 = vcmp.eq.s32.totalorder %v1373_v32, 75  ;;  %v822_v40 = vstv %s1210_s9  ;;  %v814_v41 = vsel %vm808_vm1, %v812_v31, %v804_v33 }
  0xbf   :  { %vm818_vm5 = vcmp.eq.s32.totalorder %v1375_v34, 75  ;;  %v815_v42 = vsel %vm809_vm2, %v812_v31, %v805_v36  ;;  %v816_v43 = vsel %vm810_vm3, %v812_v31, %v806_v38  ;;  %vm819_vm6 = vcmp.eq.s32.totalorder %v1378_v35, 75 }
  0xc0   :  { %vm820_vm7 = vcmp.eq.s32.totalorder %v1381_v37, 75  ;;  %v823_v44 = vsel %vm817_vm4, %v822_v40, %v813_v39  ;;  %vm827_vm8 = vcmp.eq.s32.totalorder %v1373_v32, 76  ;;  %v832_v45 = vstv %s1211_s10 }
  0xc1   :  { %v824_v46 = vsel %vm818_vm5, %v822_v40, %v814_v41  ;;  %vm828_vm9 = vcmp.eq.s32.totalorder %v1375_v34, 76  ;;  %v825_v47 = vsel %vm819_vm6, %v822_v40, %v815_v42  ;;  %v826_v48 = vsel %vm820_vm7, %v822_v40, %v816_v43 }
  0xc2   :  { %vm829_vm10 = vcmp.eq.s32.totalorder %v1378_v35, 76  ;;  %vm830_vm11 = vcmp.eq.s32.totalorder %v1381_v37, 76  ;;  %v833_v49 = vsel %vm827_vm8, %v832_v45, %v823_v44  ;;  %vm837_vm12 = vcmp.eq.s32.totalorder %v1373_v32, 77 }
  0xc3   :  { %v842_v50 = vstv %s1212_s11  ;;  %v834_v51 = vsel %vm828_vm9, %v832_v45, %v824_v46  ;;  %vm838_vm13 = vcmp.eq.s32.totalorder %v1375_v34, 77  ;;  %v835_v52 = vsel %vm829_vm10, %v832_v45, %v825_v47  ;;  %s1125_s11 = sshll.u32 %s2039_s3, 4  ;;  %s1126_s11 = int_to_ptr.hbm [resolvable:$true] %s1125_s11 }
  0xc4   :  { %v836_v53 = vsel %vm830_vm11, %v832_v45, %v826_v48  ;;  %vm839_vm14 = vcmp.eq.s32.totalorder %v1378_v35, 77  ;;  %vm840_vm15 = vcmp.eq.s32.totalorder %v1381_v37, 77  ;;  %v843_v54 = vsel %vm837_vm12, %v842_v50, %v833_v49 }
  0xc5   :  { %vm847_vm0 = vcmp.eq.s32.totalorder %v1373_v32, 78  ;;  %v852_v55 = vstv %s1213_s12  ;;  %v844_v56 = vsel %vm838_vm13, %v842_v50, %v834_v51  ;;  %vm848_vm1 = vcmp.eq.s32.totalorder %v1375_v34, 78 }
  0xc6   :  { %v845_v57 = vsel %vm839_vm14, %v842_v50, %v835_v52  ;;  %v846_v58 = vsel %vm840_vm15, %v842_v50, %v836_v53  ;;  %vm849_vm2 = vcmp.eq.s32.totalorder %v1378_v35, 78  ;;  %vm850_vm3 = vcmp.eq.s32.totalorder %v1381_v37, 78 }
  0xc7   :  { %v853_v59 = vsel %vm847_vm0, %v852_v55, %v843_v54  ;;  %vm857_vm4 = vcmp.eq.s32.totalorder %v1373_v32, 79  ;;  %v862_v60 = vstv %s1214_s13  ;;  %v854_v61 = vsel %vm848_vm1, %v852_v55, %v844_v56 }
  0xc8   :  { %vm858_vm5 = vcmp.eq.s32.totalorder %v1375_v34, 79  ;;  %v855_v62 = vsel %vm849_vm2, %v852_v55, %v845_v57  ;;  %v856_v63 = vsel %vm850_vm3, %v852_v55, %v846_v58  ;;  %vm859_vm6 = vcmp.eq.s32.totalorder %v1378_v35, 79 }
  0xc9   :  { %vm860_vm7 = vcmp.eq.s32.totalorder %v1381_v37, 79  ;;  %v863_v0 = vsel %vm857_vm4, %v862_v60, %v853_v59  ;;  %vm867_vm8 = vcmp.eq.s32.totalorder %v1373_v32, 80  ;;  %v872_v1 = vstv %s1215_s14 }
  0xca   :  { %v864_v2 = vsel %vm858_vm5, %v862_v60, %v854_v61  ;;  %vm868_vm9 = vcmp.eq.s32.totalorder %v1375_v34, 80  ;;  %v865_v3 = vsel %vm859_vm6, %v862_v60, %v855_v62  ;;  %v866_v4 = vsel %vm860_vm7, %v862_v60, %v856_v63 }
  0xcb   :  { %vm869_vm10 = vcmp.eq.s32.totalorder %v1378_v35, 80  ;;  %vm870_vm11 = vcmp.eq.s32.totalorder %v1381_v37, 80  ;;  %v873_v5 = vsel %vm867_vm8, %v872_v1, %v863_v0  ;;  %vm877_vm12 = vcmp.eq.s32.totalorder %v1373_v32, 81 }
  0xcc   :  { %v882_v6 = vstv %s1216_s15  ;;  %v874_v7 = vsel %vm868_vm9, %v872_v1, %v864_v2  ;;  %vm878_vm13 = vcmp.eq.s32.totalorder %v1375_v34, 81  ;;  %v875_v8 = vsel %vm869_vm10, %v872_v1, %v865_v3 }
  0xcd   :  { %v876_v9 = vsel %vm870_vm11, %v872_v1, %v866_v4  ;;  %vm879_vm14 = vcmp.eq.s32.totalorder %v1378_v35, 81  ;;  %vm880_vm15 = vcmp.eq.s32.totalorder %v1381_v37, 81  ;;  %v883_v10 = vsel %vm877_vm12, %v882_v6, %v873_v5  ;;  %v1957_v5 = vld [vmem:[#allocation3] sm:$0xff] }
  0xce   :  { %vm887_vm0 = vcmp.eq.s32.totalorder %v1373_v32, 82  ;;  %v892_v11 = vstv %s1217_s16  ;;  %v884_v12 = vsel %vm878_vm13, %v882_v6, %v874_v7  ;;  %vm888_vm1 = vcmp.eq.s32.totalorder %v1375_v34, 82  ;;  %v1960_v7 = vld [vmem:[#allocation3 + $0x8] sm:$0xff] }
  0xcf   :  { %v885_v13 = vsel %vm879_vm14, %v882_v6, %v875_v8  ;;  %v886_v14 = vsel %vm880_vm15, %v882_v6, %v876_v9  ;;  %vm889_vm2 = vcmp.eq.s32.totalorder %v1378_v35, 82  ;;  %vm890_vm3 = vcmp.eq.s32.totalorder %v1381_v37, 82  ;;  %v1963_v9 = vld [vmem:[#allocation3 + $0x10] sm:$0xff] }
  0xd0   :  { %v893_v15 = vsel %vm887_vm0, %v892_v11, %v883_v10  ;;  %vm897_vm4 = vcmp.eq.s32.totalorder %v1373_v32, 83  ;;  %v902_v16 = vstv %s1218_s17  ;;  %v894_v17 = vsel %vm888_vm1, %v892_v11, %v884_v12 }
  0xd1   :  { %vm898_vm5 = vcmp.eq.s32.totalorder %v1375_v34, 83  ;;  %v895_v18 = vsel %vm889_vm2, %v892_v11, %v885_v13  ;;  %v896_v19 = vsel %vm890_vm3, %v892_v11, %v886_v14  ;;  %vm899_vm6 = vcmp.eq.s32.totalorder %v1378_v35, 83  ;;  %v1970_v14 = vld [vmem:[#allocation3 + $0x18] sm:$0xff] }
  0xd2   :  { %vm900_vm7 = vcmp.eq.s32.totalorder %v1381_v37, 83  ;;  %v903_v20 = vsel %vm897_vm4, %v902_v16, %v893_v15  ;;  %vm907_vm8 = vcmp.eq.s32.totalorder %v1373_v32, 84  ;;  %v912_v21 = vstv %s1219_s18 }
  0xd3   :  { %v904_v22 = vsel %vm898_vm5, %v902_v16, %v894_v17  ;;  %vm908_vm9 = vcmp.eq.s32.totalorder %v1375_v34, 84  ;;  %v905_v23 = vsel %vm899_vm6, %v902_v16, %v895_v18  ;;  %v906_v24 = vsel %vm900_vm7, %v902_v16, %v896_v19 }
  0xd4   :  { %vm909_vm10 = vcmp.eq.s32.totalorder %v1378_v35, 84  ;;  %vm910_vm11 = vcmp.eq.s32.totalorder %v1381_v37, 84  ;;  %v913_v25 = vsel %vm907_vm8, %v912_v21, %v903_v20  ;;  %vm917_vm12 = vcmp.eq.s32.totalorder %v1373_v32, 85 }
  0xd5   :  { %v922_v26 = vstv %s1220_s19  ;;  %v914_v27 = vsel %vm908_vm9, %v912_v21, %v904_v22  ;;  %vm918_vm13 = vcmp.eq.s32.totalorder %v1375_v34, 85  ;;  %v915_v28 = vsel %vm909_vm10, %v912_v21, %v905_v23 }
  0xd6   :  { %v916_v29 = vsel %vm910_vm11, %v912_v21, %v906_v24  ;;  %vm919_vm14 = vcmp.eq.s32.totalorder %v1378_v35, 85  ;;  %vm920_vm15 = vcmp.eq.s32.totalorder %v1381_v37, 85  ;;  %v923_v30 = vsel %vm917_vm12, %v922_v26, %v913_v25 }
  0xd7   :  { %vm927_vm0 = vcmp.eq.s32.totalorder %v1373_v32, 86  ;;  %v932_v31 = vstv %s1221_s20  ;;  %v924_v33 = vsel %vm918_vm13, %v922_v26, %v914_v27  ;;  %vm928_vm1 = vcmp.eq.s32.totalorder %v1375_v34, 86 }
  0xd8   :  { %v925_v36 = vsel %vm919_vm14, %v922_v26, %v915_v28  ;;  %v926_v38 = vsel %vm920_vm15, %v922_v26, %v916_v29  ;;  %vm929_vm2 = vcmp.eq.s32.totalorder %v1378_v35, 86  ;;  %vm930_vm3 = vcmp.eq.s32.totalorder %v1381_v37, 86 }
  0xd9   :  { %v933_v39 = vsel %vm927_vm0, %v932_v31, %v923_v30  ;;  %vm937_vm4 = vcmp.eq.s32.totalorder %v1373_v32, 87  ;;  %v942_v40 = vstv %s1222_s0  ;;  %v934_v41 = vsel %vm928_vm1, %v932_v31, %v924_v33 }
  0xda   :  { %vm938_vm5 = vcmp.eq.s32.totalorder %v1375_v34, 87  ;;  %v935_v42 = vsel %vm929_vm2, %v932_v31, %v925_v36  ;;  %v936_v43 = vsel %vm930_vm3, %v932_v31, %v926_v38  ;;  %vm939_vm6 = vcmp.eq.s32.totalorder %v1378_v35, 87 }
  0xdb   :  { %vm940_vm7 = vcmp.eq.s32.totalorder %v1381_v37, 87  ;;  %v943_v44 = vsel %vm937_vm4, %v942_v40, %v933_v39  ;;  %vm947_vm8 = vcmp.eq.s32.totalorder %v1373_v32, 88  ;;  %v952_v45 = vstv %s1223_s21 }
  0xdc   :  { %v944_v46 = vsel %vm938_vm5, %v942_v40, %v934_v41  ;;  %vm948_vm9 = vcmp.eq.s32.totalorder %v1375_v34, 88  ;;  %v945_v47 = vsel %vm939_vm6, %v942_v40, %v935_v42  ;;  %v946_v48 = vsel %vm940_vm7, %v942_v40, %v936_v43 }
  0xdd   :  { %vm949_vm10 = vcmp.eq.s32.totalorder %v1378_v35, 88  ;;  %vm950_vm11 = vcmp.eq.s32.totalorder %v1381_v37, 88  ;;  %v953_v49 = vsel %vm947_vm8, %v952_v45, %v943_v44  ;;  %vm957_vm12 = vcmp.eq.s32.totalorder %v1373_v32, 89 }
  0xde   :  { %v962_v50 = vstv %s1224_s1  ;;  %v954_v51 = vsel %vm948_vm9, %v952_v45, %v944_v46  ;;  %vm958_vm13 = vcmp.eq.s32.totalorder %v1375_v34, 89  ;;  %v955_v52 = vsel %vm949_vm10, %v952_v45, %v945_v47 }
  0xdf   :  { %v956_v53 = vsel %vm950_vm11, %v952_v45, %v946_v48  ;;  %vm959_vm14 = vcmp.eq.s32.totalorder %v1378_v35, 89  ;;  %vm960_vm15 = vcmp.eq.s32.totalorder %v1381_v37, 89  ;;  %v963_v54 = vsel %vm957_vm12, %v962_v50, %v953_v49 }
  0xe0   :  { %vm967_vm0 = vcmp.eq.s32.totalorder %v1373_v32, 90  ;;  %v972_v55 = vstv %s1225_s22  ;;  %v964_v56 = vsel %vm958_vm13, %v962_v50, %v954_v51  ;;  %vm968_vm1 = vcmp.eq.s32.totalorder %v1375_v34, 90 }
  0xe1   :  { %v965_v57 = vsel %vm959_vm14, %v962_v50, %v955_v52  ;;  %v966_v58 = vsel %vm960_vm15, %v962_v50, %v956_v53  ;;  %vm969_vm2 = vcmp.eq.s32.totalorder %v1378_v35, 90  ;;  %vm970_vm3 = vcmp.eq.s32.totalorder %v1381_v37, 90 }
  0xe2   :  { %v973_v59 = vsel %vm967_vm0, %v972_v55, %v963_v54  ;;  %v974_v60 = vsel %vm968_vm1, %v972_v55, %v964_v56  ;;  %vm977_vm4 = vcmp.eq.s32.totalorder %v1373_v32, 91  ;;  %vm978_vm5 = vcmp.eq.s32.totalorder %v1375_v34, 91 }
  0xe3   :  { %v982_v61 = vstv %s1226_s23  ;;  %v975_v62 = vsel %vm969_vm2, %v972_v55, %v965_v57  ;;  %v976_v63 = vsel %vm970_vm3, %v972_v55, %v966_v58  ;;  %vm979_vm6 = vcmp.eq.s32.totalorder %v1378_v35, 91 }
  0xe4   :  { %vm980_vm7 = vcmp.eq.s32.totalorder %v1381_v37, 91  ;;  %vm987_vm8 = vcmp.eq.s32.totalorder %v1373_v32, 92  ;;  %v983_v0 = vsel %vm977_vm4, %v982_v61, %v973_v59  ;;  %v984_v1 = vsel %vm978_vm5, %v982_v61, %v974_v60 }
  0xe5   :  { %vm988_vm9 = vcmp.eq.s32.totalorder %v1375_v34, 92  ;;  %v992_v2 = vstv %s1227_s24  ;;  %v985_v3 = vsel %vm979_vm6, %v982_v61, %v975_v62  ;;  %v986_v4 = vsel %vm980_vm7, %v982_v61, %v976_v63 }
  0xe6   :  { %vm989_vm10 = vcmp.eq.s32.totalorder %v1378_v35, 92  ;;  %vm990_vm11 = vcmp.eq.s32.totalorder %v1381_v37, 92  ;;  %v1067_v6 = vsub.f32 0.0, %v1957_v5  ;;  %v1068_v8 = vsub.f32 0.0, %v1960_v7 }
  0xe7   :  { %v1069_v10 = vsub.f32 0.0, %v1963_v9  ;;  %v993_v11 = vsel %vm987_vm8, %v992_v2, %v983_v0  ;;  %v994_v12 = vsel %vm988_vm9, %v992_v2, %v984_v1  ;;  %vm997_vm12 = vcmp.eq.s32.totalorder %v1373_v32, 93 }
  0xe8   :  { %vm998_vm13 = vcmp.eq.s32.totalorder %v1375_v34, 93  ;;  %v1002_v13 = vstv %s1228_s25  ;;  %v1070_v15 = vsub.f32 0.0, %v1970_v14  ;;  %v1071_v16 = vmul.f32 1.442695, %v1067_v6 }
  0xe9   :  { %v1073_v17 = vmul.f32 1.442695, %v1068_v8  ;;  %v995_v18 = vsel %vm989_vm10, %v992_v2, %v985_v3  ;;  %v996_v19 = vsel %vm990_vm11, %v992_v2, %v986_v4  ;;  %vm999_vm14 = vcmp.eq.s32.totalorder %v1378_v35, 93 }
  0xea   :  { %v1075_v20 = vmul.f32 1.442695, %v1069_v10  ;;  %vm1000_vm15 = vcmp.eq.s32.totalorder %v1381_v37, 93  ;;  %vm1007_vm0 = vcmp.eq.s32.totalorder %v1373_v32, 94  ;;  %1258 = vpow2.f32 %v1071_v16 }
  0xeb   :  { %v1077_v21 = vmul.f32 1.442695, %v1070_v15  ;;  %v1003_v22 = vsel %vm997_vm12, %v1002_v13, %v993_v11  ;;  %v1004_v23 = vsel %vm998_vm13, %v1002_v13, %v994_v12  ;;  %v1012_v24 = vstv %s1950_s26 }
  0xec   :  { %1260 = vpow2.f32 %v1073_v17  ;;  %v1005_v25 = vsel %vm999_vm14, %v1002_v13, %v995_v18  ;;  %vm1008_vm1 = vcmp.eq.s32.totalorder %v1375_v34, 94  ;;  %vm1009_vm2 = vcmp.eq.s32.totalorder %v1378_v35, 94 }
  0xed   :  { %1262 = vpow2.f32 %v1075_v20  ;;  %v1006_v26 = vsel %vm1000_vm15, %v1002_v13, %v996_v19  ;;  %vm1010_vm3 = vcmp.eq.s32.totalorder %v1381_v37, 94  ;;  %v1013_v27 = vsel %vm1007_vm0, %v1012_v24, %v1003_v22 }
  0xee   :  { %1264 = vpow2.f32 %v1077_v21  ;;  %vm1017_vm4 = vcmp.eq.s32.totalorder %v1373_v32, 95  ;;  %v1022_v28 = vstv %s1955_s27  ;;  %v1014_v29 = vsel %vm1008_vm1, %v1012_v24, %v1004_v23 }
  0xef   :  { %v1015_v30 = vsel %vm1009_vm2, %v1012_v24, %v1005_v25  ;;  %vm1018_vm5 = vcmp.eq.s32.totalorder %v1375_v34, 95  ;;  %vm1019_vm6 = vcmp.eq.s32.totalorder %v1378_v35, 95  ;;  %v1016_v33 = vsel %vm1010_vm3, %v1012_v24, %v1006_v26 }
  0xf0   :  { %v1259_v31 = vpop.eup %1258  ;;  %vm1020_vm7 = vcmp.eq.s32.totalorder %v1381_v37, 95  ;;  %vm1027_vm8 = vcmp.eq.s32.totalorder %v1373_v32, 96  ;;  %v1023_v38 = vsel %vm1017_vm4, %v1022_v28, %v1013_v27  ;;  %vm1028_vm9 = vcmp.eq.s32.totalorder %v1375_v34, 96 }
  0xf1   :  { %vm1029_vm10 = vcmp.eq.s32.totalorder %v1378_v35, 96  ;;  %v1079_v39 = vadd.f32 1.0, %v1259_v31  ;;  %v1024_v41 = vsel %vm1018_vm5, %v1022_v28, %v1014_v29  ;;  %v1025_v42 = vsel %vm1019_vm6, %v1022_v28, %v1015_v30 }
  0xf2   :  { %v1261_v36 = vpop.eup %1260  ;;  %v1032_v43 = vstv %s1980_s28  ;;  %v1026_v46 = vsel %vm1020_vm7, %v1022_v28, %v1016_v33  ;;  %vm1030_vm11 = vcmp.eq.s32.totalorder %v1381_v37, 96  ;;  %vm1037_vm12 = vcmp.eq.s32.totalorder %v1373_v32, 97 }
  0xf3   :  { %v1263_v40 = vpop.eup %1262  ;;  %v1080_v44 = vadd.f32 1.0, %v1261_v36  ;;  %1266 = vrcp.f32 %v1079_v39  ;;  %vm1038_vm13 = vcmp.eq.s32.totalorder %v1375_v34, 97  ;;  %v1033_v49 = vsel %vm1027_vm8, %v1032_v43, %v1023_v38 }
  0xf4   :  { %v1265_v45 = vpop.eup %1264  ;;  %v1081_v47 = vadd.f32 1.0, %v1263_v40  ;;  %v1034_v50 = vsel %vm1028_vm9, %v1032_v43, %v1024_v41  ;;  %v1042_v51 = vstv %s1990_s29  ;;  %v1035_v52 = vsel %vm1029_vm10, %v1032_v43, %v1025_v42 }
  0xf5   :  { %v1082_v48 = vadd.f32 1.0, %v1265_v45  ;;  %1268 = vrcp.f32 %v1080_v44  ;;  %v1036_v53 = vsel %vm1030_vm11, %v1032_v43, %v1026_v46  ;;  %vm1039_vm14 = vcmp.eq.s32.totalorder %v1378_v35, 97 }
  0xf6   :  { %1270 = vrcp.f32 %v1081_v47  ;;  %vm1040_vm15 = vcmp.eq.s32.totalorder %v1381_v37, 97  ;;  %vm1047_vm0 = vcmp.eq.s32.totalorder %v1373_v32, 98  ;;  %v1043_v54 = vsel %vm1037_vm12, %v1042_v51, %v1033_v49 }
  0xf7   :  { %1272 = vrcp.f32 %v1082_v48  ;;  %v1044_v55 = vsel %vm1038_vm13, %v1042_v51, %v1034_v50  ;;  %vm1048_vm1 = vcmp.eq.s32.totalorder %v1375_v34, 98  ;;  %v1052_v56 = vstv %s2000_s30 }
  0xf8   :  { %v1045_v59 = vsel %vm1039_vm14, %v1042_v51, %v1035_v52  ;;  %v1046_v60 = vsel %vm1040_vm15, %v1042_v51, %v1036_v53  ;;  %vm1049_vm2 = vcmp.eq.s32.totalorder %v1378_v35, 98  ;;  %vm1050_vm3 = vcmp.eq.s32.totalorder %v1381_v37, 98 }
  0xf9   :  { %v1267_v57 = vpop.eup %1266  ;;  %v1053_v63 = vsel %vm1047_vm0, %v1052_v56, %v1043_v54  ;;  %v1054_v0 = vsel %vm1048_vm1, %v1052_v56, %v1044_v55  ;;  %vm1057_vm4 = vcmp.eq.s32.totalorder %v1373_v32, 99  ;;  %v1062_v3 = vstv %s1234_s4 }
  0xfa   :  { %v1087_v61 = vmul.f32 %v1267_v57, %v1079_v39  ;;  %v1055_v8 = vsel %vm1049_vm2, %v1052_v56, %v1045_v59  ;;  %vm1058_vm5 = vcmp.eq.s32.totalorder %v1375_v34, 99  ;;  %v1056_v12 = vsel %vm1050_vm3, %v1052_v56, %v1046_v60 }
  0xfb   :  { %v1269_v58 = vpop.eup %1268  ;;  %vm1059_vm6 = vcmp.eq.s32.totalorder %v1378_v35, 99  ;;  %vm1060_vm7 = vcmp.eq.s32.totalorder %v1381_v37, 99  ;;  %v1063_v16 = vsel %vm1057_vm4, %v1062_v3, %v1053_v63  ;;  %v1064_v19 = vsel %vm1058_vm5, %v1062_v3, %v1054_v0 }
  0xfc   :  { %v1271_v62 = vpop.eup %1270  ;;  %v1088_v1 = vmul.f32 %v1269_v58, %v1080_v44  ;;  %v1091_v6 = vsub.f32 2.0, %v1087_v61  ;;  %v1065_v21 = vsel %vm1059_vm6, %v1062_v3, %v1055_v8  ;;  %v1107_v23 = vstv %s2038_s2 }
  0xfd   :  { %v1273_v2 = vpop.eup %1272  ;;  %v1089_v4 = vmul.f32 %v1271_v62, %v1081_v47  ;;  %v1066_v35 = vsel %vm1060_vm7, %v1062_v3, %v1056_v12 }
  0xfe   :  { %v1090_v10 = vmul.f32 %v1273_v2, %v1082_v48  ;;  %v1092_v11 = vsub.f32 2.0, %v1088_v1  ;;  %v1095_v15 = vmul.f32 %v1267_v57, %v1091_v6 }
  0xff   :  { %v1093_v13 = vsub.f32 2.0, %v1089_v4 }
 0x100   :  { %v1094_v17 = vsub.f32 2.0, %v1090_v10  ;;  %v1096_v18 = vmul.f32 %v1269_v58, %v1092_v11  ;;  %v1099_v20 = vmul.f32 %v1957_v5, %v1095_v15 }
 0x101   :  { %v1097_v32 = vmul.f32 %v1271_v62, %v1093_v13 }
 0x102   :  { %v1098_v22 = vmul.f32 %v1273_v2, %v1094_v17  ;;  %v1100_v34 = vmul.f32 %v1960_v7, %v1096_v18  ;;  %v1103_v25 = vadd.f32 %v1099_v20, %v1063_v16 }
 0x103   :  { %v1101_v24 = vmul.f32 %v1963_v9, %v1097_v32 }
 0x104   :  { %v1102_v37 = vmul.f32 %v1970_v14, %v1098_v22  ;;  %v1104_v26 = vadd.f32 %v1100_v34, %v1064_v19  ;;  %v1108_v28 = vmul.f32 %v1107_v23, %v1103_v25 }
 0x105   :  { %v1105_v27 = vadd.f32 %v1101_v24, %v1065_v21 }
 0x106   :  { %v1106_v5 = vadd.f32 %v1102_v37, %v1066_v35  ;;  %v1109_v7 = vmul.f32 %v1107_v23, %v1104_v26  ;;  %1114 = vst [vmem:[#allocation8] sm:$0xff] %v1108_v28 }
 0x107   :  { %v1110_v29 = vmul.f32 %v1107_v23, %v1105_v27 }
 0x108   :  { %v1111_v30 = vmul.f32 %v1107_v23, %v1106_v5  ;;  %1115 = vst [vmem:[#allocation8 + $0x8] sm:$0xff] %v1109_v7 }
 0x109   :  { %1116 = vst [vmem:[#allocation8 + $0x10] sm:$0xff] %v1110_v29 }
 0x10a   :  { %1117 = vst [vmem:[#allocation8 + $0x18] sm:$0xff] %v1111_v30 }
 0x10b   :  { %1128 = dma.vmem_to_hbm [thread:$0]  %s1124_s8, 512, %s1126_s11, [#allocation5]  }
 0x10c   :  { %1342 = dma.done.wait [#allocation5], 512  }
 0x10d   :  { %1343 = vsyncadd [#allocation5], 4294966784 }
 0x10e   :  { %1133 = vsyncpa [#allocation4], 1 }
 0x10f   :  { %1134 = vsyncpa [#allocation5], 1 }
 0x110   :  { %1135 = vsyncpa [#allocation6], 1 }

</bundles_post_ra>
